<compile_context>
chip_gen: v7x
topology: tpu7x:2x2x1
jax: 0.10.0
libtpu: 0.0.40
codegen_flags: <defaults>
</compile_context>

<pallas_src>
import functools

import jax
import jax.numpy as jnp
from jax.experimental import pallas as pl
from jax.experimental.pallas import tpu as pltpu


def _round_up(x, m):
    return ((x + m - 1) // m) * m


# ------------------------------------------------------------------- kernels
def _fused_conv_kernel(x_ref, w_ref, sc_ref, sh_ref, o_ref, *,
                       taps, rows, w_pad, dilation, kw_size):
    """One padded image per grid step; conv = sum over taps of row-shifted GEMMs.

    x_ref : (1, rows_tot*W_pad, C_in_p)  bf16  flattened zero-padded NHWC image
    w_ref : (taps, C_in_p, C_out_p)      bf16  per-tap weight slabs
    sc/sh : (1, C_out_p)                 f32   folded BatchNorm scale / (bias+BN) shift
    o_ref : (1, rows, C_out_p)           f32   rows = OH*W_pad (cols >= OW sliced off later)
    """
    acc = jnp.zeros((rows, o_ref.shape[-1]), jnp.float32)
    for t in range(taps):
        kh, kw = divmod(t, kw_size)
        off = dilation * (kh * w_pad + kw)        # static flat row offset of tap (kh, kw)
        lhs = x_ref[0, off:off + rows, :]         # contiguous (rows, C_in_p) slice
        acc += jnp.dot(lhs, w_ref[t], preferred_element_type=jnp.float32)
    acc = acc * sc_ref[...] + sh_ref[...]         # folded conv-bias + BatchNorm
    o_ref[0] = jnp.where(acc >= 0.0, acc, 0.1 * acc).astype(o_ref.dtype)  # LeakyReLU(0.1)


def _im2col_gemm_kernel(p_ref, w_ref, sc_ref, sh_ref, o_ref):
    """(tm, K) @ (K, C_out_p) GEMM tile + folded bias/BN + LeakyReLU(0.1)."""
    acc = jnp.dot(p_ref[...], w_ref[...], preferred_element_type=jnp.float32)
    acc = acc * sc_ref[...] + sh_ref[...]
    o_ref[...] = jnp.where(acc >= 0.0, acc, 0.1 * acc).astype(o_ref.dtype)


# ------------------------------------------------------------------- wrapper
def conv2d_bn_relu(x, weight, bias, *, stride, padding, dilation=1,
                   with_bn=False, bn_gamma=None, bn_beta=None,
                   bn_mean=None, bn_var=None, bn_eps=1e-5):
    """x: (N, C_in, H, W) NCHW f32; weight: (C_out, C_in, KH, KW); bias: (C_out,)."""
    N, C_in, H, W = x.shape
    C_out, _, KH, KW = weight.shape
    OH = (H + 2 * padding - dilation * (KH - 1) - 1) // stride + 1
    OW = (W + 2 * padding - dilation * (KW - 1) - 1) // stride + 1
    C_out_p = _round_up(C_out, 128)        # lane-dense: full 128-wide unmasked stores

    # Fold conv bias and (eval-mode) BatchNorm into a single per-channel scale/shift.
    # TODO(synk): PyTorch training-mode BatchNorm2d uses batch statistics of the conv
    # output (two-pass reduction over N,H,W); only eval-mode running stats are folded.
    bias = bias.astype(jnp.float32)
    if with_bn:
        inv_std = 1.0 / jnp.sqrt(bn_var.astype(jnp.float32) + bn_eps)
        scale = bn_gamma.astype(jnp.float32) * inv_std
        shift = bn_beta.astype(jnp.float32) + (bias - bn_mean.astype(jnp.float32)) * scale
    else:
        scale = jnp.ones((C_out,), jnp.float32)
        shift = bias
    scale = jnp.pad(scale, (0, C_out_p - C_out)).reshape(1, C_out_p)
    shift = jnp.pad(shift, (0, C_out_p - C_out)).reshape(1, C_out_p)

    x_nhwc = jnp.transpose(x, (0, 2, 3, 1))          # (N, H, W, C_in)

    # ----------------------------------------------------------- fused path (stride 1)
    if stride == 1:
        C_in_p = _round_up(C_in, 8)                  # sublane-aligned per-tap weight slabs
        H_pad, W_pad = H + 2 * padding, W + 2 * padding
        # extra zero rows so the largest tap offset stays inside the flat image
        extra = -(-(dilation * (KW - 1)) // W_pad)
        rows_tot = H_pad + extra
        rows = OH * W_pad                            # per-image GEMM rows (cols >= OW junk)
        taps = KH * KW

        vmem_bytes = (2 * rows_tot * W_pad * C_in_p * 2      # double-buffered image block
                      + 2 * taps * C_in_p * C_out_p * 2      # weight slabs
                      + 3 * rows * C_out_p * 4)              # out blocks + f32 accumulator
        if vmem_bytes <= 24 * 1024 * 1024:                   # headroom within v7x's 64 MiB
            x_flat = jnp.pad(
                x_nhwc, ((0, 0), (padding, padding + extra), (padding, padding),
                         (0, C_in_p - C_in))).astype(jnp.bfloat16)
            x_flat = x_flat.reshape(N, rows_tot * W_pad, C_in_p)

            w_taps = jnp.transpose(weight, (2, 3, 1, 0)).reshape(taps, C_in, C_out)
            w_taps = jnp.pad(w_taps, ((0, 0), (0, C_in_p - C_in),
                                      (0, C_out_p - C_out))).astype(jnp.bfloat16)

            kernel = functools.partial(_fused_conv_kernel, taps=taps, rows=rows,
                                       w_pad=W_pad, dilation=dilation, kw_size=KW)
            out = pl.pallas_call(
                kernel,
                out_shape=jax.ShapeDtypeStruct((N, rows, C_out_p), jnp.float32),
                grid_spec=pltpu.PrefetchScalarGridSpec(
                    num_scalar_prefetch=0,
                    grid=(N,),                               # >=2 parallel steps (v7x 2 TCs)
                    in_specs=[
                        pl.BlockSpec((1, rows_tot * W_pad, C_in_p), lambda n: (n, 0, 0)),
                        pl.BlockSpec((taps, C_in_p, C_out_p), lambda n: (0, 0, 0)),
                        pl.BlockSpec((1, C_out_p), lambda n: (0, 0)),
                        pl.BlockSpec((1, C_out_p), lambda n: (0, 0)),
                    ],
                    out_specs=pl.BlockSpec((1, rows, C_out_p), lambda n: (n, 0, 0)),
                ),
                compiler_params=pltpu.CompilerParams(
                    dimension_semantics=("parallel",),
                    vmem_limit_bytes=min(64 * 1024 * 1024,
                                         max(4 * vmem_bytes, 16 * 1024 * 1024))),
            )(x_flat, w_taps, scale, shift)
            out = out.reshape(N, OH, W_pad, C_out_p)[:, :, :OW, :C_out]
            return jnp.transpose(out, (0, 3, 1, 2))          # NHWC -> NCHW

    # --------------------------------------------- general im2col GEMM fallback path
    # (stride > 1, or images too large for a per-image VMEM block).
    # TODO(synk): large stride-1 images would be better served by row-tiling (halo
    # blocks) of the fused kernel instead of materializing im2col patches.
    K = KH * KW * C_in
    M = N * OH * OW
    x_pad = jnp.pad(x_nhwc, ((0, 0), (padding, padding), (padding, padding),
                             (0, 0))).astype(jnp.bfloat16)
    cols = []
    for kh in range(KH):
        for kw in range(KW):
            h0, w0 = kh * dilation, kw * dilation
            cols.append(x_pad[:, h0:h0 + (OH - 1) * stride + 1:stride,
                                 w0:w0 + (OW - 1) * stride + 1:stride, :])
    patches = jnp.concatenate(cols, axis=-1).reshape(M, K)      # bf16 (M, KH*KW*C_in)

    tm = min(512, _round_up(-(-M // 2), 8))                     # big tiles, >=2 grid steps
    M_pad = _round_up(M, tm)
    if M_pad != M:
        patches = jnp.pad(patches, ((0, M_pad - M), (0, 0)))

    w_mat = jnp.transpose(weight, (2, 3, 1, 0)).reshape(K, C_out)
    w_mat = jnp.pad(w_mat, ((0, 0), (0, C_out_p - C_out))).astype(jnp.bfloat16)

    tile_bytes = 2 * tm * K * 2 + K * C_out_p * 2 + 2 * tm * C_out_p * 4
    out_flat = pl.pallas_call(
        _im2col_gemm_kernel,
        out_shape=jax.ShapeDtypeStruct((M_pad, C_out_p), jnp.float32),
        grid_spec=pltpu.PrefetchScalarGridSpec(
            num_scalar_prefetch=0,
            grid=(M_pad // tm,),
            in_specs=[
                pl.BlockSpec((tm, K), lambda i: (i, 0)),        # patches tile
                pl.BlockSpec((K, C_out_p), lambda i: (0, 0)),   # full weight matrix
                pl.BlockSpec((1, C_out_p), lambda i: (0, 0)),   # folded scale
                pl.BlockSpec((1, C_out_p), lambda i: (0, 0)),   # folded shift (bias+BN)
            ],
            out_specs=pl.BlockSpec((tm, C_out_p), lambda i: (i, 0)),
        ),
        compiler_params=pltpu.CompilerParams(
            dimension_semantics=("parallel",),
            vmem_limit_bytes=min(64 * 1024 * 1024,
                                 max(4 * tile_bytes, 16 * 1024 * 1024))),
    )(patches, w_mat, scale, shift)
    out = out_flat[:M, :C_out].reshape(N, OH, OW, C_out)
    return jnp.transpose(out, (0, 3, 1, 2))


# ------------------------------------------------------------------- test
if __name__ == "__main__":
    key = jax.random.PRNGKey(0)
    kx, kw_, kb, kbn = jax.random.split(key, 4)

    # Module config: conv2DBatchNormRelu(in_channels=4, n_filters=8, k_size=3,
    #                                    stride=1, padding=1, dilation=1, with_bn=False)
    N, C_in, H, W = 2, 4, 16, 16
    C_out, KH, KW = 8, 3, 3

    x = jax.random.normal(kx, (N, C_in, H, W), dtype=jnp.float32)
    bound = 1.0 / (C_in * KH * KW) ** 0.5
    weight = jax.random.uniform(kw_, (C_out, C_in, KH, KW),
                                minval=-bound, maxval=bound, dtype=jnp.float32)
    bias = jax.random.uniform(kb, (C_out,), minval=-bound, maxval=bound,
                              dtype=jnp.float32)
    kg, kbe, kmu, kva = jax.random.split(kbn, 4)
    gamma = jax.random.uniform(kg, (C_out,), minval=0.5, maxval=1.5, dtype=jnp.float32)
    beta = 0.1 * jax.random.normal(kbe, (C_out,), dtype=jnp.float32)
    mean = 0.1 * jax.random.normal(kmu, (C_out,), dtype=jnp.float32)
    var = jax.random.uniform(kva, (C_out,), minval=0.5, maxval=1.5, dtype=jnp.float32)

    def reference(x, w, b, stride, padding, dilation, with_bn, eps=1e-5):
        # Same bf16 rounding of x/w that the kernel's MXU operands use; rest in f32.
        xq = x.astype(jnp.bfloat16).astype(jnp.float32)
        wq = w.astype(jnp.bfloat16).astype(jnp.float32)
        y = jax.lax.conv_general_dilated(
            xq, wq, window_strides=(stride, stride),
            padding=((padding, padding), (padding, padding)),
            rhs_dilation=(dilation, dilation),
            dimension_numbers=("NCHW", "OIHW", "NCHW"),
            precision=jax.lax.Precision.HIGHEST)
        y = y + b.reshape(1, -1, 1, 1)
        if with_bn:
            y = ((y - mean.reshape(1, -1, 1, 1))
                 / jnp.sqrt(var.reshape(1, -1, 1, 1) + eps)
                 * gamma.reshape(1, -1, 1, 1) + beta.reshape(1, -1, 1, 1))
        return jnp.where(y >= 0.0, y, 0.1 * y)

    cases = [
        dict(stride=1, padding=1, dilation=1, with_bn=False),   # fused path (primary config)
        dict(stride=1, padding=2, dilation=2, with_bn=True),    # fused path + dilation + BN
        dict(stride=2, padding=1, dilation=1, with_bn=False),   # im2col fallback path
    ]
    for cfg in cases:
        bn_kwargs = dict(with_bn=cfg["with_bn"])
        if cfg["with_bn"]:
            bn_kwargs.update(bn_gamma=gamma, bn_beta=beta, bn_mean=mean, bn_var=var)
        out = conv2d_bn_relu(x, weight, bias, stride=cfg["stride"],
                             padding=cfg["padding"], dilation=cfg["dilation"],
                             **bn_kwargs)
        out = jax.block_until_ready(out)
        ref = reference(x, weight, bias, cfg["stride"], cfg["padding"],
                        cfg["dilation"], cfg["with_bn"])
        assert out.shape == ref.shape, (out.shape, ref.shape)
        assert jnp.allclose(out, ref, atol=2e-3, rtol=2e-3), (
            cfg, float(jnp.max(jnp.abs(out - ref))))

    print("KERNEL_OK")
</pallas_src>

<mosaic_0001>
module attributes {stable_mosaic.version = 11 : i64} {
  func.func @_fused_conv_kernel(%arg0: i32, %arg1: memref<1x342x8xbf16, #tpu.memory_space<vmem>>, %arg2: memref<9x8x128xbf16, #tpu.memory_space<vmem>>, %arg3: memref<1x128xf32, #tpu.memory_space<vmem>>, %arg4: memref<1x128xf32, #tpu.memory_space<vmem>>, %arg5: memref<1x288x128xf32, #tpu.memory_space<vmem>>) attributes {dimension_semantics = [#tpu.dimension_semantics<parallel>], iteration_bounds = array<i64: 2>, scalar_prefetch = 0 : i64, scratch_operands = 0 : i64, tpu.core_type = #tpu.core_type<tc>, window_params = [{transform_indices = @transform_0, window_bounds = array<i64: 1, 342, 8>}, {pipeline_mode = #tpu.pipeline_mode<synchronous>, transform_indices = @transform_1, window_bounds = array<i64: 9, 8, 128>}, {pipeline_mode = #tpu.pipeline_mode<synchronous>, transform_indices = @transform_2, window_bounds = array<i64: 1, 128>}, {pipeline_mode = #tpu.pipeline_mode<synchronous>, transform_indices = @transform_3, window_bounds = array<i64: 1, 128>}, {transform_indices = @transform_4, window_bounds = array<i64: 1, 288, 128>}]} {
    %cst = arith.constant 0.000000e+00 : f32
    %0 = vector.broadcast %cst : f32 to vector<288x128xf32>
    %c0 = arith.constant 0 : index
    %c0_0 = arith.constant 0 : index
    %c0_1 = arith.constant 0 : index
    %1 = vector.load %arg1[%c0, %c0_0, %c0_1] : memref<1x342x8xbf16, #tpu.memory_space<vmem>>, vector<1x288x8xbf16>
    %2 = vector.shape_cast %1 : vector<1x288x8xbf16> to vector<288x8xbf16>
    %c0_2 = arith.constant 0 : index
    %c0_3 = arith.constant 0 : index
    %c0_4 = arith.constant 0 : index
    %3 = vector.load %arg2[%c0_2, %c0_3, %c0_4] : memref<9x8x128xbf16, #tpu.memory_space<vmem>>, vector<1x8x128xbf16>
    %4 = vector.shape_cast %3 : vector<1x8x128xbf16> to vector<8x128xbf16>
    %cst_5 = arith.constant dense<0.000000e+00> : vector<288x128xf32>
    %5 = tpu.matmul %2, %4, %cst_5 {dimension_numbers = #tpu.dot_dimension_numbers<[1], [0], [0], [1], [0, 0, 1, 1], [], []>} : vector<288x8xbf16>, vector<8x128xbf16>, vector<288x128xf32> -> vector<288x128xf32>
    %6 = arith.addf %0, %5 : vector<288x128xf32>
    %c0_6 = arith.constant 0 : index
    %c1 = arith.constant 1 : index
    %c0_7 = arith.constant 0 : index
    %7 = vector.load %arg1[%c0_6, %c1, %c0_7] : memref<1x342x8xbf16, #tpu.memory_space<vmem>>, vector<1x288x8xbf16>
    %8 = vector.shape_cast %7 : vector<1x288x8xbf16> to vector<288x8xbf16>
    %c1_8 = arith.constant 1 : index
    %c0_9 = arith.constant 0 : index
    %c0_10 = arith.constant 0 : index
    %9 = vector.load %arg2[%c1_8, %c0_9, %c0_10] : memref<9x8x128xbf16, #tpu.memory_space<vmem>>, vector<1x8x128xbf16>
    %10 = vector.shape_cast %9 : vector<1x8x128xbf16> to vector<8x128xbf16>
    %cst_11 = arith.constant dense<0.000000e+00> : vector<288x128xf32>
    %11 = tpu.matmul %8, %10, %cst_11 {dimension_numbers = #tpu.dot_dimension_numbers<[1], [0], [0], [1], [0, 0, 1, 1], [], []>} : vector<288x8xbf16>, vector<8x128xbf16>, vector<288x128xf32> -> vector<288x128xf32>
    %12 = arith.addf %6, %11 : vector<288x128xf32>
    %c0_12 = arith.constant 0 : index
    %c2 = arith.constant 2 : index
    %c0_13 = arith.constant 0 : index
    %13 = vector.load %arg1[%c0_12, %c2, %c0_13] : memref<1x342x8xbf16, #tpu.memory_space<vmem>>, vector<1x288x8xbf16>
    %14 = vector.shape_cast %13 : vector<1x288x8xbf16> to vector<288x8xbf16>
    %c2_14 = arith.constant 2 : index
    %c0_15 = arith.constant 0 : index
    %c0_16 = arith.constant 0 : index
    %15 = vector.load %arg2[%c2_14, %c0_15, %c0_16] : memref<9x8x128xbf16, #tpu.memory_space<vmem>>, vector<1x8x128xbf16>
    %16 = vector.shape_cast %15 : vector<1x8x128xbf16> to vector<8x128xbf16>
    %cst_17 = arith.constant dense<0.000000e+00> : vector<288x128xf32>
    %17 = tpu.matmul %14, %16, %cst_17 {dimension_numbers = #tpu.dot_dimension_numbers<[1], [0], [0], [1], [0, 0, 1, 1], [], []>} : vector<288x8xbf16>, vector<8x128xbf16>, vector<288x128xf32> -> vector<288x128xf32>
    %18 = arith.addf %12, %17 : vector<288x128xf32>
    %c0_18 = arith.constant 0 : index
    %c18 = arith.constant 18 : index
    %c0_19 = arith.constant 0 : index
    %19 = vector.load %arg1[%c0_18, %c18, %c0_19] : memref<1x342x8xbf16, #tpu.memory_space<vmem>>, vector<1x288x8xbf16>
    %20 = vector.shape_cast %19 : vector<1x288x8xbf16> to vector<288x8xbf16>
    %c3 = arith.constant 3 : index
    %c0_20 = arith.constant 0 : index
    %c0_21 = arith.constant 0 : index
    %21 = vector.load %arg2[%c3, %c0_20, %c0_21] : memref<9x8x128xbf16, #tpu.memory_space<vmem>>, vector<1x8x128xbf16>
    %22 = vector.shape_cast %21 : vector<1x8x128xbf16> to vector<8x128xbf16>
    %cst_22 = arith.constant dense<0.000000e+00> : vector<288x128xf32>
    %23 = tpu.matmul %20, %22, %cst_22 {dimension_numbers = #tpu.dot_dimension_numbers<[1], [0], [0], [1], [0, 0, 1, 1], [], []>} : vector<288x8xbf16>, vector<8x128xbf16>, vector<288x128xf32> -> vector<288x128xf32>
    %24 = arith.addf %18, %23 : vector<288x128xf32>
    %c0_23 = arith.constant 0 : index
    %c19 = arith.constant 19 : index
    %c0_24 = arith.constant 0 : index
    %25 = vector.load %arg1[%c0_23, %c19, %c0_24] : memref<1x342x8xbf16, #tpu.memory_space<vmem>>, vector<1x288x8xbf16>
    %26 = vector.shape_cast %25 : vector<1x288x8xbf16> to vector<288x8xbf16>
    %c4 = arith.constant 4 : index
    %c0_25 = arith.constant 0 : index
    %c0_26 = arith.constant 0 : index
    %27 = vector.load %arg2[%c4, %c0_25, %c0_26] : memref<9x8x128xbf16, #tpu.memory_space<vmem>>, vector<1x8x128xbf16>
    %28 = vector.shape_cast %27 : vector<1x8x128xbf16> to vector<8x128xbf16>
    %cst_27 = arith.constant dense<0.000000e+00> : vector<288x128xf32>
    %29 = tpu.matmul %26, %28, %cst_27 {dimension_numbers = #tpu.dot_dimension_numbers<[1], [0], [0], [1], [0, 0, 1, 1], [], []>} : vector<288x8xbf16>, vector<8x128xbf16>, vector<288x128xf32> -> vector<288x128xf32>
    %30 = arith.addf %24, %29 : vector<288x128xf32>
    %c0_28 = arith.constant 0 : index
    %c20 = arith.constant 20 : index
    %c0_29 = arith.constant 0 : index
    %31 = vector.load %arg1[%c0_28, %c20, %c0_29] : memref<1x342x8xbf16, #tpu.memory_space<vmem>>, vector<1x288x8xbf16>
    %32 = vector.shape_cast %31 : vector<1x288x8xbf16> to vector<288x8xbf16>
    %c5 = arith.constant 5 : index
    %c0_30 = arith.constant 0 : index
    %c0_31 = arith.constant 0 : index
    %33 = vector.load %arg2[%c5, %c0_30, %c0_31] : memref<9x8x128xbf16, #tpu.memory_space<vmem>>, vector<1x8x128xbf16>
    %34 = vector.shape_cast %33 : vector<1x8x128xbf16> to vector<8x128xbf16>
    %cst_32 = arith.constant dense<0.000000e+00> : vector<288x128xf32>
    %35 = tpu.matmul %32, %34, %cst_32 {dimension_numbers = #tpu.dot_dimension_numbers<[1], [0], [0], [1], [0, 0, 1, 1], [], []>} : vector<288x8xbf16>, vector<8x128xbf16>, vector<288x128xf32> -> vector<288x128xf32>
    %36 = arith.addf %30, %35 : vector<288x128xf32>
    %c0_33 = arith.constant 0 : index
    %c36 = arith.constant 36 : index
    %c0_34 = arith.constant 0 : index
    %37 = vector.load %arg1[%c0_33, %c36, %c0_34] : memref<1x342x8xbf16, #tpu.memory_space<vmem>>, vector<1x288x8xbf16>
    %38 = vector.shape_cast %37 : vector<1x288x8xbf16> to vector<288x8xbf16>
    %c6 = arith.constant 6 : index
    %c0_35 = arith.constant 0 : index
    %c0_36 = arith.constant 0 : index
    %39 = vector.load %arg2[%c6, %c0_35, %c0_36] : memref<9x8x128xbf16, #tpu.memory_space<vmem>>, vector<1x8x128xbf16>
    %40 = vector.shape_cast %39 : vector<1x8x128xbf16> to vector<8x128xbf16>
    %cst_37 = arith.constant dense<0.000000e+00> : vector<288x128xf32>
    %41 = tpu.matmul %38, %40, %cst_37 {dimension_numbers = #tpu.dot_dimension_numbers<[1], [0], [0], [1], [0, 0, 1, 1], [], []>} : vector<288x8xbf16>, vector<8x128xbf16>, vector<288x128xf32> -> vector<288x128xf32>
    %42 = arith.addf %36, %41 : vector<288x128xf32>
    %c0_38 = arith.constant 0 : index
    %c37 = arith.constant 37 : index
    %c0_39 = arith.constant 0 : index
    %43 = vector.load %arg1[%c0_38, %c37, %c0_39] : memref<1x342x8xbf16, #tpu.memory_space<vmem>>, vector<1x288x8xbf16>
    %44 = vector.shape_cast %43 : vector<1x288x8xbf16> to vector<288x8xbf16>
    %c7 = arith.constant 7 : index
    %c0_40 = arith.constant 0 : index
    %c0_41 = arith.constant 0 : index
    %45 = vector.load %arg2[%c7, %c0_40, %c0_41] : memref<9x8x128xbf16, #tpu.memory_space<vmem>>, vector<1x8x128xbf16>
    %46 = vector.shape_cast %45 : vector<1x8x128xbf16> to vector<8x128xbf16>
    %cst_42 = arith.constant dense<0.000000e+00> : vector<288x128xf32>
    %47 = tpu.matmul %44, %46, %cst_42 {dimension_numbers = #tpu.dot_dimension_numbers<[1], [0], [0], [1], [0, 0, 1, 1], [], []>} : vector<288x8xbf16>, vector<8x128xbf16>, vector<288x128xf32> -> vector<288x128xf32>
    %48 = arith.addf %42, %47 : vector<288x128xf32>
    %c0_43 = arith.constant 0 : index
    %c38 = arith.constant 38 : index
    %c0_44 = arith.constant 0 : index
    %49 = vector.load %arg1[%c0_43, %c38, %c0_44] : memref<1x342x8xbf16, #tpu.memory_space<vmem>>, vector<1x288x8xbf16>
    %50 = vector.shape_cast %49 : vector<1x288x8xbf16> to vector<288x8xbf16>
    %c8 = arith.constant 8 : index
    %c0_45 = arith.constant 0 : index
    %c0_46 = arith.constant 0 : index
    %51 = vector.load %arg2[%c8, %c0_45, %c0_46] : memref<9x8x128xbf16, #tpu.memory_space<vmem>>, vector<1x8x128xbf16>
    %52 = vector.shape_cast %51 : vector<1x8x128xbf16> to vector<8x128xbf16>
    %cst_47 = arith.constant dense<0.000000e+00> : vector<288x128xf32>
    %53 = tpu.matmul %50, %52, %cst_47 {dimension_numbers = #tpu.dot_dimension_numbers<[1], [0], [0], [1], [0, 0, 1, 1], [], []>} : vector<288x8xbf16>, vector<8x128xbf16>, vector<288x128xf32> -> vector<288x128xf32>
    %54 = arith.addf %48, %53 : vector<288x128xf32>
    %c0_48 = arith.constant 0 : index
    %c0_49 = arith.constant 0 : index
    %55 = vector.load %arg3[%c0_48, %c0_49] : memref<1x128xf32, #tpu.memory_space<vmem>>, vector<1x128xf32>
    %56 = vector.broadcast %55 : vector<1x128xf32> to vector<288x128xf32>
    %57 = arith.mulf %54, %56 : vector<288x128xf32>
    %c0_50 = arith.constant 0 : index
    %c0_51 = arith.constant 0 : index
    %58 = vector.load %arg4[%c0_50, %c0_51] : memref<1x128xf32, #tpu.memory_space<vmem>>, vector<1x128xf32>
    %59 = vector.broadcast %58 : vector<1x128xf32> to vector<288x128xf32>
    %60 = arith.addf %57, %59 : vector<288x128xf32>
    %cst_52 = arith.constant 0.000000e+00 : f32
    %61 = vector.broadcast %cst_52 : f32 to vector<288x128xf32>
    %62 = arith.cmpf oge, %60, %61 : vector<288x128xf32>
    %cst_53 = arith.constant 1.000000e-01 : f32
    %63 = vector.broadcast %cst_53 : f32 to vector<288x128xf32>
    %64 = arith.mulf %63, %60 : vector<288x128xf32>
    %65 = arith.select %62, %60, %64 : vector<288x128xi1>, vector<288x128xf32>
    %c0_54 = arith.constant 0 : index
    %c0_55 = arith.constant 0 : index
    %c0_56 = arith.constant 0 : index
    %66 = vector.load %arg5[%c0_54, %c0_55, %c0_56] : memref<1x288x128xf32, #tpu.memory_space<vmem>>, vector<1x288x128xf32>
    %67 = vector.shape_cast %66 : vector<1x288x128xf32> to vector<288x128xf32>
    %68 = vector.shape_cast %65 : vector<288x128xf32> to vector<1x288x128xf32>
    tpu.vector_store %arg5[%c0_54, %c0_55, %c0_56], %68 {strides = array<i32>} : memref<1x288x128xf32, #tpu.memory_space<vmem>>, vector<1x288x128xf32>,
    return
  }
  func.func @transform_0(%arg0: i32) -> (i32, i32, i32) {
    %c0_i32 = arith.constant 0 : i32
    %c0_i32_0 = arith.constant 0 : i32
    %c0_i32_1 = arith.constant 0 : i32
    return %arg0, %c0_i32, %c0_i32_0 : i32, i32, i32
  }
  func.func @transform_1(%arg0: i32) -> (i32, i32, i32) {
    %c0_i32 = arith.constant 0 : i32
    %c0_i32_0 = arith.constant 0 : i32
    %c0_i32_1 = arith.constant 0 : i32
    %c0_i32_2 = arith.constant 0 : i32
    return %c0_i32, %c0_i32_0, %c0_i32_1 : i32, i32, i32
  }
  func.func @transform_2(%arg0: i32) -> (i32, i32) {
    %c0_i32 = arith.constant 0 : i32
    %c0_i32_0 = arith.constant 0 : i32
    %c0_i32_1 = arith.constant 0 : i32
    return %c0_i32, %c0_i32_0 : i32, i32
  }
  func.func @transform_3(%arg0: i32) -> (i32, i32) {
    %c0_i32 = arith.constant 0 : i32
    %c0_i32_0 = arith.constant 0 : i32
    %c0_i32_1 = arith.constant 0 : i32
    return %c0_i32, %c0_i32_0 : i32, i32
  }
  func.func @transform_4(%arg0: i32) -> (i32, i32, i32) {
    %c0_i32 = arith.constant 0 : i32
    %c0_i32_0 = arith.constant 0 : i32
    %c0_i32_1 = arith.constant 0 : i32
    return %arg0, %c0_i32, %c0_i32_0 : i32, i32, i32
  }
}

</mosaic_0001>

<bundles_post_ra>
// kernel: tpu_custom_call.1
= control target key start
LH: loop header
LB: loop body
LE: loop exit
PB: predicated region body
PF: predicated region fallthrough
CT: control target
= control target key end

     0   :  { %9 = vsyncpa [#allocation3], 0  ;;  %s6288_s0 = inlined_call_operand.vmem [shape: bf16[2,342,8], index: 0, kind: input, shape index: {}]   ;;  %s6289_s1 = inlined_call_operand.vmem [shape: bf16[9,8,128], index: 1, kind: input, shape index: {}]   ;;  %s6290_s2 = inlined_call_operand.vmem [shape: f32[1,128], index: 2, kind: input, shape index: {}]   ;;  %s6291_s3 = inlined_call_operand.vmem [shape: f32[1,128], index: 3, kind: input, shape index: {}]   ;;  %s6292_s4 = inlined_call_operand.hbm [shape: f32[2,288,128], index: 4, kind: output, shape index: {}]  }
   0x1   :  { %11 = vsyncpa [#allocation3 + $0x1], 0  ;;  %s5215_s15 = smov 0   ;;  %s5217_s16 = smov 0  }
   0x2   :  { %s5219_s17 = smov 0   ;;  %s5221_s18 = smov 0  }
   0x3 LB: > { %s5236_s19 = sadd.s32 4294967295, %s5185_s18   ;;  %s3951_s20 = sadd.s32 4294967294, %s5185_s18   ;;  %s5185_s18 = sphi %s5221_s18, %s6298_s18   ;;  %s5181_s17 = sphi %s5219_s17, %s6297_s17   ;;  %s5177_s16 = sphi %s5217_s16, %s6296_s16   ;;  %s5173_s15 = sphi %s5215_s15, %s6295_s15  }
   0x4   : > { %s5240_s21 = sadd.s32 1, %s5185_s18   ;;  %s113_s22 = sadd.s32 1, %s5181_s17 }
   0x5   : > { %s110_s23 = ssub.s32 %s5185_s18, %s5240_s21  ;;  %p123_p0 = scmp.ne.s32.totalorder %s5181_s17, %s5177_s16 }
   0x6   : > { %p111_p1 = scmp.eq.s32.totalorder %s110_s23, 0  ;;  %p124_p2 = scmp.eq.s32.totalorder %s5236_s19, 1 }
   0x7   : > { %p129_p3 = scmp.ne.s32.totalorder %s5177_s16, %s5173_s15  ;;  %p130_p4 = scmp.eq.s32.totalorder %s3951_s20, 1 }
   0x8   : > { %s5251_s24 = scalar_select %p111_p1, %s5181_s17, %s113_s22  }
   0x9   : > { %p5253_p5 = por %p124_p2, %p123_p0  ;;  %p5257_p6 = por %p130_p4, %p129_p3 }
   0xa   : > { %p3954_p7 = scmp.ge.s32.totalorder %s5185_s18, 1  ;;  %p165_p8 = scmp.lt.s32.totalorder %s5185_s18, 3 }
   0xc   : > { %p166_p9 = pnand %p3954_p7, %p165_p8 }
   0xd   : > { %vm534_vm0 = vcmask (!%p166_p9), 1043456   ;;  %v4070_v0 = vld [vmem:[%s6289_s1 + $0x10] sm:$0xf] (!%p166_p9)  ;;  %v3956_v1 = vld [vmem:[%s6289_s1 + $0x4] sm:$0xf] (!%p166_p9)  ;;  %p191_p10 = scmp.lt.s32.totalorder (!%p166_p9), %s5236_s19, 1 }
   0xe   : > { %169 = sbr.rel (%p166_p9) target bundleno = 599 (0x257), region = 36  ;;  %5000 = vmatprep.subr.msk.bf16.mxu0 (!%p166_p9), %vm534_vm0, %v4070_v0  ;;  %4996 = vmatprep.subr.msk.bf16.mxu1 (!%p166_p9), %vm534_vm0, %v3956_v1  ;;  %v5273_v2 = vsel (!%p166_p9), %vm534_vm0, %v4070_v0, 0  ;;  %v536_v3 = vsel (!%p166_p9), %vm534_vm0, %v3956_v1, 0  ;;  %v4090_v4 = vld [vmem:[%s6289_s1 + $0x14] sm:$0xf] (!%p166_p9)  ;;  %vm479_vm2 = vcmask (!%p166_p9), 64512  }
   0xf   : > { %4517 = vmatpush3.bf16.msra.mxu0 (!%p166_p9), %v5273_v2  ;;  %4365 = vmatpush3.bf16.msra.mxu1 (!%p166_p9), %v536_v3  ;;  %v233_v5 = vld [vmem:[%s6289_s1] sm:$0xf] (!%p166_p9)  ;;  %vm330_vm1 = vsmask.f32 (!%p166_p9), 7424  ;;  %v5292_v6 = vsel (!%p166_p9), %vm534_vm0, %v4090_v4, 0  ;;  %vm2137_vm4 = vcmask (!%p166_p9), 1045504  }
  0x10   : > { %5002 = vmatprep.subr.msk.bf16.mxu0 (!%p166_p9), %vm534_vm0, %v4090_v4  ;;  %4997 = vmatprep.subr.msk.bf16.mxu1 (!%p166_p9), %vm534_vm0, %v233_v5  ;;  %vm1690_vm3 = vsmask.f32 (!%p166_p9), 6400  ;;  %v752_v12 = vsel (!%p166_p9), %vm534_vm0, %v233_v5, 0  ;;  %v5340_v39 = vld [vmem:[%s6289_s1 + $0x8] sm:$0xf] (!%p166_p9)  ;;  %vm937_vm5 = vcmask (!%p166_p9), 1046528  }
  0x11   : > { %v5374_v1 = vld [vmem:[%s6289_s1 + $0x18] sm:$0xf] (!%p166_p9)  ;;  %vm2890_vm6 = vsmask.f32 (!%p166_p9), 5376  ;;  %vm3337_vm7 = vcmask (!%p166_p9), 1044480   ;;  %s188_s9 = sand.u32 (!%p166_p9), 1, %s5177_s16  }
  0x12   : > { %s5006_s14 = smul.u32 (!%p166_p9), 288, %s188_s9  ;;  %s6247_s29 = scalar_lea.sflag (!%p166_p9), [#allocation3], %s188_s9 }
  0x13   : > { %s5008_s22 = smul.u32 (!%p166_p9), 4608, %s5236_s19 }
  0x14   : > { %s6113_s20 = scalar_lea.vmem (!%p166_p9), [#allocation2], %s5006_s14 }
  0x15   : > { %s192_s5 = scalar_select %p191_p10, %s5236_s19, 1 }
  0x16   : > { %s3889_s23 = sshll.u32 %s6113_s20, 4  ;;  %s6238_s28 = scalar_lea.hbm %s6292_s4, %s5008_s22  ;;  %s6240_s23 = int_to_ptr.vmem [resolvable:$true] %s3889_s23 }
  0x17   : > { %s5007_s10 = smul.u32 172, %s192_s5  ;;  %s5123_s30 = scalar_lea.vmem %s6240_s23, 4608 }
  0x18   : > { %p5124_p11 = scmp.ne.s32.totalorder %s6240_s23, %s5123_s30  ;;  %s5187_s5 = smov [#allocation2]  }
  0x19   : > { %s5289_s13 = scalar_lea.vmem %s6288_s0, %s5007_s10  ;;  %s5127_s6 = sshll.u32 %s5187_s5, 4  ;;  %s5128_s6 = int_to_ptr.vmem [resolvable:$false] %s5127_s6 }
  0x1a   : > { %v197_v7 = vld [vmem:[%s5289_s13] sm:$0xf]  ;;  %v5296_v8 = vld [vmem:[%s5289_s13 + $0x4] sm:$0xf]  ;;  %v5302_v10 = vld [vmem:[%s5289_s13 + $0x8] sm:$0xff]   ;;  %p5125_p12 = pnand %p5124_p11, %p5253_p5  ;;  %s5129_s7 = scalar_lea.vmem %s5128_s6, 9216 }
  0x1b   : > { %v5299_v9 = vcombine.low %v197_v7, %v5296_v8  ;;  %v1245_v11 = vld [vmem:[%s5289_s13 + $0x8] sm:$0xe]  ;;  %v5307_v13 = vld [vmem:[%s5289_s13 + $0xc] sm:$0xf]  ;;  %v339_v16 = vshll.u32 %v5302_v10, 16  ;;  %v343_v17 = vshrl.u32 %v5302_v10, 16  ;;  %p5130_p0 = scmp.lt.s32.totalorder %s6240_s23, %s5128_s6  ;;  %p5131_p1 = scmp.lt.s32.totalorder %s5129_s7, %s5123_s30 }
  0x1c   : > { %v5314_v18 = vld [vmem:[%s5289_s13 + $0x10] sm:$0xff]   ;;  %v5320_v20 = vcombine.low %v1245_v11, %v5307_v13  ;;  %v5328_v28 = vld [vmem:[%s5289_s13 + $0x18] sm:$0xff]   ;;  %v5334_v34 = vld [vmem:[%s5289_s13 + $0x20] sm:$0xff]   ;;  %p5126_p13 = pneg %p5125_p12 }
  0x1d   : > { %v332_v14 = vshrl.u32 %v5299_v9, 16  ;;  %v334_v15 = vshll.u32 %v5299_v9, 16  ;;  %v5317_v19 = vld [vmem:[%s5289_s13 + $0x10] sm:$0xff]   ;;  %v341_v22 = vrot.slane %v339_v16, 1  ;;  %v1700_v23 = vshrl.u32 %v5314_v18, 16  ;;  %v5331_v33 = vld [vmem:[%s5289_s13 + $0x18] sm:$0xff]   ;;  %p5132_p2 = por %p5131_p1, %p5130_p0 }
  0x1e   : > { %v1703_v24 = vshll.u32 %v5314_v18, 16  ;;  %v1692_v25 = vshrl.u32 %v5320_v20, 16  ;;  %v1695_v26 = vshll.u32 %v5320_v20, 16  ;;  %v347_v27 = vshll.u32 %v5317_v19, 16  ;;  %v5349_v48 = vld [vmem:[%s5289_s13 + $0x20] sm:$0xff]   ;;  %v5352_v49 = vld [vmem:[%s5289_s13 + $0x28] sm:$0xff]  }
  0x1f   : > { %v336_v21 = vrot.slane %v334_v15, 1  ;;  %v345_v30 = vor.u32 %v343_v17, %v341_v22  ;;  %v1702_v31 = vrot.slane %v1700_v23, 1  ;;  %v1709_v38 = vshrl.u32 %v5328_v28, 16  ;;  %v5358_v54 = vld [vmem:[%s5289_s13 + $0x28] sm:$0xff]   ;;  %v5364_v59 = vld [vmem:[%s5289_s13 + $0x30] sm:$0xff]   ;;  %v5388_v23 = vld [vmem:[%s5289_s13 + $0x38] sm:$0xff]   ;;  %p5133_p3 = pnand %p5132_p2, %p5126_p13 }
  0x20   : > { %v1705_v32 = vrot.slane %v1703_v24, 2  ;;  %v1694_v35 = vrot.slane %v1692_v25, 1  ;;  %v1697_v36 = vrot.slane %v1695_v26, 2  ;;  %v349_v37 = vrot.slane %v347_v27, 1  ;;  %v5369_v0 = vld [vmem:[%s5289_s13 + $0x30] sm:$0xff]  }
  0x21   : > { %v337_v29 = vor.u32 %v336_v21, %v332_v14  ;;  %v1712_v42 = vshll.u32 %v5328_v28, 16  ;;  %v351_v43 = vshrl.u32 %v5317_v19, 16  ;;  %v1711_v46 = vrot.slane %v1709_v38, 1 }
  0x22   : > { %v1706_v41 = vor.u32 %v1705_v32, %v1702_v31  ;;  %v1698_v44 = vor.u32 %v1697_v36, %v1694_v35  ;;  %v350_v45 = vsel %vm330_vm1, %v345_v30, %v349_v37  ;;  %v355_v47 = vshll.u32 %v5331_v33, 16  ;;  %v5397_v35 = vld [vmem:[%s5289_s13 + $0x38] sm:$0xff]  }
  0x23   : > { %v342_v40 = vsel %vm330_vm1, %v337_v29, %v341_v22  ;;  %v1714_v50 = vrot.slane %v1712_v42, 2  ;;  %v353_v51 = vor.u32 %v351_v43, %v349_v37  ;;  %v1718_v52 = vshrl.u32 %v5334_v34, 16 }
  0x24   : > { %4366 = vmatprep.mubr.msk.bf16.mxu1 %vm479_vm2, %v342_v40  ;;  %v1721_v53 = vshll.u32 %v5334_v34, 16  ;;  %v1707_v55 = vsel %vm1690_vm3, %v1698_v44, %v1706_v41  ;;  %v357_v56 = vrot.slane %v355_v47, 1  ;;  %v359_v57 = vshrl.u32 %v5331_v33, 16  ;;  %v5408_v44 = vld [vmem:[%s5289_s13 + $0x40] sm:$0xff]  }
  0x25   : > { %4367 = vmatmul.mubr.msk.bf16.vlgmr.msra.gmra.mrb[0].mxu1 %vm479_vm2, %v350_v45  ;;  %v363_v58 = vshll.u32 %v5349_v48, 16  ;;  %4518 = vmatprep.mubr.msk.bf16.mxu0 %vm479_vm2, %v1707_v55  ;;  %v1715_v60 = vor.u32 %v1714_v50, %v1711_v46  ;;  %v1720_v61 = vrot.slane %v1718_v52, 1  ;;  %v1727_v63 = vshrl.u32 %v5352_v49, 16 }
  0x26   : > { %4403 = vmatpush3.bf16.msra.mxu1 %v752_v12  ;;  %v1723_v62 = vrot.slane %v1721_v53, 2  ;;  %v358_v3 = vsel %vm330_vm1, %v353_v51, %v357_v56  ;;  %v361_v4 = vor.u32 %v359_v57, %v357_v56  ;;  %v1730_v7 = vshll.u32 %v5352_v49, 16  ;;  %v5413_v51 = vld [vmem:[%s5289_s13 + $0x40] sm:$0xff]  }
  0x27   : > { %4998 = vmatprep.subr.msk.bf16.mxu1 %vm534_vm0, %v5340_v39  ;;  %v365_v5 = vrot.slane %v363_v58, 1  ;;  %v1716_v11 = vsel %vm1690_vm3, %v1706_v41, %v1715_v60  ;;  %4370 = vmatprep.mubr.msk.bf16.mxu1 %vm479_vm2, %v358_v3  ;;  %v1729_v14 = vrot.slane %v1727_v63, 1  ;;  %v367_v15 = vshrl.u32 %v5349_v48, 16  ;;  %v5424_v63 = vld [vmem:[%s5289_s13 + $0x48] sm:$0xff]  }
  0x28   : > { %v1724_v12 = vor.u32 %v1723_v62, %v1720_v61  ;;  %4519 = vmatmul.mubr.msk.bf16.vlgmr.msra.gmra.mrb[0].mxu0 %vm479_vm2, %v1716_v11  ;;  %v1732_v17 = vrot.slane %v1730_v7, 2  ;;  %v371_v21 = vshll.u32 %v5358_v54, 16  ;;  %v1736_v22 = vshrl.u32 %v5364_v59, 16  ;;  %v5421_v62 = vld [vmem:[%s5289_s13 + $0x48] sm:$0xff]  }
  0x29   : > { %v366_v16 = vsel %vm330_vm1, %v361_v4, %v365_v5  ;;  %4555 = vmatpush3.bf16.msra.mxu0 %v5292_v6  ;;  %v369_v25 = vor.u32 %v367_v15, %v365_v5  ;;  %v1739_v26 = vshll.u32 %v5364_v59, 16  ;;  %v375_v27 = vshrl.u32 %v5358_v54, 16 }
  0x2a   : > { %v1725_v24 = vsel %vm1690_vm3, %v1715_v60, %v1724_v12  ;;  %v1733_v29 = vor.u32 %v1732_v17, %v1729_v14  ;;  %v373_v30 = vrot.slane %v371_v21, 1  ;;  %v1738_v31 = vrot.slane %v1736_v22, 1  ;;  %5003 = vmatprep.subr.msk.bf16.mxu0 %vm534_vm0, %v5374_v1  ;;  %v5433_v14 = vld [vmem:[%s5289_s13 + $0x50] sm:$0xff]  }
  0x2b   : > { %4522 = vmatprep.mubr.msk.bf16.mxu0 %vm479_vm2, %v1725_v24  ;;  %v379_v32 = vshll.u32 %v5369_v0, 16  ;;  %v1741_v6 = vrot.slane %v1739_v26, 2  ;;  %v1745_v36 = vshrl.u32 %v5388_v23, 16  ;;  %v1748_v37 = vshll.u32 %v5388_v23, 16 }
  0x2c   : > { %v383_v38 = vshrl.u32 %v5369_v0, 16  ;;  %v1734_v40 = vsel %vm1690_vm3, %v1724_v12, %v1733_v29  ;;  %v374_v41 = vsel %vm330_vm1, %v369_v25, %v373_v30  ;;  %v377_v42 = vor.u32 %v375_v27, %v373_v30  ;;  %v5441_v25 = vld [vmem:[%s5289_s13 + $0x50] sm:$0xff]  }
  0x2d   : > { %4371 = vmatmul.mubr.msk.bf16.gmra.mrb[4].mxu1 %vm479_vm2, %v366_v16  ;;  %v381_v43 = vrot.slane %v379_v32, 1  ;;  %v1742_v45 = vor.u32 %v1741_v6, %v1738_v31  ;;  %v1747_v46 = vrot.slane %v1745_v36, 1  ;;  %v1750_v47 = vrot.slane %v1748_v37, 2 }
  0x2e   : > { %4374 = vmatprep.mubr.msk.bf16.mxu1 %vm479_vm2, %v374_v41  ;;  %v387_v50 = vshll.u32 %v5397_v35, 16  ;;  %v1754_v55 = vshrl.u32 %v5408_v44, 16  ;;  %v1757_v56 = vshll.u32 %v5408_v44, 16  ;;  %v391_v61 = vshrl.u32 %v5397_v35, 16  ;;  %v5451_v41 = vld [vmem:[%s5289_s13 + $0x58] sm:$0xff]  }
  0x2f   : > { %v382_v52 = vsel %vm330_vm1, %v377_v42, %v381_v43  ;;  %v385_v53 = vor.u32 %v383_v38, %v381_v43  ;;  %v1743_v57 = vsel %vm1690_vm3, %v1733_v29, %v1742_v45  ;;  %v1751_v58 = vor.u32 %v1750_v47, %v1747_v46  ;;  %v5446_v29 = vld [vmem:[%s5289_s13 + $0x58] sm:$0xff]  }
  0x30   : > { %v389_v60 = vrot.slane %v387_v50, 1  ;;  %4523 = vmatmul.mubr.msk.bf16.gmra.mrb[4].mxu0 %vm479_vm2, %v1734_v40  ;;  %v1756_v3 = vrot.slane %v1754_v55, 1  ;;  %v1759_v4 = vrot.slane %v1757_v56, 2  ;;  %v395_v5 = vshll.u32 %v5413_v51, 16 }
  0x31   : > { %v399_v7 = vshrl.u32 %v5413_v51, 16  ;;  %4526 = vmatprep.mubr.msk.bf16.mxu0 %vm479_vm2, %v1743_v57  ;;  %v1763_v12 = vshrl.u32 %v5421_v62, 16  ;;  %v1766_v16 = vshll.u32 %v5421_v62, 16  ;;  %v403_v17 = vshll.u32 %v5424_v63, 16  ;;  %v2131_v57 = vld [vmem:[%s5289_s13 + $0x8] sm:$0xc] }
  0x32   : > { %v390_v11 = vsel %vm330_vm1, %v385_v53, %v389_v60  ;;  %v1760_v15 = vor.u32 %v1759_v4, %v1756_v3  ;;  %v397_v21 = vrot.slane %v395_v5, 1  ;;  %v1772_v22 = vshrl.u32 %v5433_v14, 16 }
  0x33   : > { %v1775_v24 = vshll.u32 %v5433_v14, 16  ;;  %v1752_v26 = vsel %vm1690_vm3, %v1742_v45, %v1751_v58  ;;  %v393_v27 = vor.u32 %v391_v61, %v389_v60  ;;  %v1765_v30 = vrot.slane %v1763_v12, 1 }
  0x34   : > { %v1768_v31 = vrot.slane %v1766_v16, 2  ;;  %v401_v32 = vor.u32 %v399_v7, %v397_v21  ;;  %v405_v6 = vrot.slane %v403_v17, 1  ;;  %v1761_v36 = vsel %vm1690_vm3, %v1751_v58, %v1760_v15  ;;  %v5465_v58 = vld [vmem:[%s5289_s13 + $0x60] sm:$0xff]  }
  0x35   : > { %4375 = vmatmul.mubr.msk.bf16.gmra.mrb[8].mxu1 %vm479_vm2, %v382_v52  ;;  %v1774_v37 = vrot.slane %v1772_v22, 1  ;;  %v1777_v38 = vrot.slane %v1775_v24, 2  ;;  %v411_v40 = vshll.u32 %v5441_v25, 16  ;;  %v398_v42 = vsel %vm330_vm1, %v393_v27, %v397_v21 }
  0x36   : > { %4378 = vmatprep.mubr.msk.bf16.mxu1 %vm479_vm2, %v390_v11  ;;  %v407_v43 = vshrl.u32 %v5424_v63, 16  ;;  %v1781_v45 = vshrl.u32 %v5446_v29, 16  ;;  %v1784_v46 = vshll.u32 %v5446_v29, 16  ;;  %v1769_v47 = vor.u32 %v1768_v31, %v1765_v30  ;;  %v5470_v11 = vld [vmem:[%s5289_s13 + $0x68] sm:$0xff]  }
  0x37   : > { %v406_v50 = vsel %vm330_vm1, %v401_v32, %v405_v6  ;;  %v415_v52 = vshrl.u32 %v5441_v25, 16  ;;  %v419_v53 = vshll.u32 %v5451_v41, 16  ;;  %v1778_v55 = vor.u32 %v1777_v38, %v1774_v37  ;;  %v5487_v32 = vld [vmem:[%s5289_s13 + $0x70] sm:$0xff]  }
  0x38   : > { %4527 = vmatmul.mubr.msk.bf16.gmra.mrb[8].mxu0 %vm479_vm2, %v1752_v26  ;;  %v413_v56 = vrot.slane %v411_v40, 1  ;;  %v409_v60 = vor.u32 %v407_v43, %v405_v6  ;;  %v1783_v61 = vrot.slane %v1781_v45, 1  ;;  %v1786_v3 = vrot.slane %v1784_v46, 2  ;;  %v5493_v40 = vld [vmem:[%s5289_s13 + $0x78] sm:$0xff]  }
  0x39   : > { %4530 = vmatprep.mubr.msk.bf16.mxu0 %vm479_vm2, %v1761_v36  ;;  %v1770_v4 = vsel %vm1690_vm3, %v1760_v15, %v1769_v47  ;;  %v421_v7 = vrot.slane %v419_v53, 1  ;;  %v1779_v12 = vsel %vm1690_vm3, %v1769_v47, %v1778_v55  ;;  %v4091_v16 = vcombine.low %v2131_v57, %v5307_v13 }
  0x3a   : > { %v417_v5 = vor.u32 %v415_v52, %v413_v56  ;;  %v427_v17 = vshll.u32 %v5465_v58, 16  ;;  %v414_v21 = vsel %vm330_vm1, %v409_v60, %v413_v56  ;;  %v423_v22 = vshrl.u32 %v5451_v41, 16  ;;  %v5508_v56 = vld [vmem:[%s5289_s13 + $0x80] sm:$0xff]  }
  0x3b   : > { %v5479_v15 = vor.u32 %v1786_v3, %v1783_v61  ;;  %v431_v26 = vshrl.u32 %v5465_v58, 16  ;;  %v435_v27 = vshll.u32 %v5470_v11, 16  ;;  %v2138_v13 = vrot.slane %v4091_v16, 2 }
  0x3c   : > { %v422_v24 = vsel %vm330_vm1, %v417_v5, %v421_v7  ;;  %v2139_v30 = vrot.slane %v5314_v18, 2  ;;  %v429_v31 = vrot.slane %v427_v17, 1  ;;  %v425_v6 = vor.u32 %v423_v22, %v421_v7 }
  0x3d   : > { %4379 = vmatmul.mubr.msk.bf16.gmra.mrb[12].mxu1 %vm479_vm2, %v398_v42  ;;  %v1788_v36 = vsel %vm1690_vm3, %v1778_v55, %v5479_v15  ;;  %v437_v38 = vrot.slane %v435_v27, 1  ;;  %v443_v18 = vshll.u32 %v5487_v32, 16  ;;  %v2141_v45 = vrot.slane %v5328_v28, 2  ;;  %v5538_v27 = vld [vmem:[%s5289_s13 + $0x90] ss:$0 sps:$4 sm:$0x11]  }
  0x3e   : > { %4382 = vmatprep.mubr.msk.bf16.mxu1 %vm479_vm2, %v406_v50  ;;  %v433_v37 = vor.u32 %v431_v26, %v429_v31  ;;  %v2140_v42 = vsel %vm2137_vm4, %v2138_v13, %v2139_v30  ;;  %v430_v43 = vsel %vm330_vm1, %v425_v6, %v429_v31  ;;  %v439_v46 = vshrl.u32 %v5470_v11, 16 }
  0x3f   : > { %v447_v50 = vshrl.u32 %v5487_v32, 16  ;;  %v451_v52 = vshll.u32 %v5493_v40, 16  ;;  %v2143_v53 = vrot.slane %v5334_v34, 2  ;;  %v445_v55 = vrot.slane %v443_v18, 1  ;;  %v5521_v34 = vld [vmem:[%s6289_s1 + $0x1c] sm:$0xf] }
  0x40   : > { %4531 = vmatmul.mubr.msk.bf16.gmra.mrb[12].mxu0 %vm479_vm2, %v1770_v4  ;;  %v438_v47 = vsel %vm330_vm1, %v433_v37, %v437_v38  ;;  %v2669_v28 = vsel %vm534_vm0, %v5374_v1, 0  ;;  %v441_v57 = vor.u32 %v439_v46, %v437_v38  ;;  %v2142_v60 = vsel %vm2137_vm4, %v2139_v30, %v2141_v45  ;;  %v5515_v4 = vld [vmem:[%s5289_s13 + $0x88] sm:$0xff]  }
  0x41   : > { %4534 = vmatprep.mubr.msk.bf16.mxu0 %vm479_vm2, %v1779_v12  ;;  %v449_v61 = vor.u32 %v447_v50, %v445_v55  ;;  %v453_v3 = vrot.slane %v451_v52, 1  ;;  %v2144_v5 = vsel %vm2137_vm4, %v2141_v45, %v2143_v53  ;;  %v459_v7 = vshll.u32 %v5508_v56, 16 }
  0x42   : > { %v446_v1 = vsel %vm330_vm1, %v441_v57, %v445_v55  ;;  %v2145_v12 = vrot.slane %v5352_v49, 2  ;;  %v455_v16 = vshrl.u32 %v5493_v40, 16  ;;  %v467_v22 = vshll.u32 %v5515_v4, 16  ;;  %v5565_v55 = vld [vmem:[%s5289_s13 + $0x60] sm:$0xff]   ;;  %v5584_v57 = vld [vmem:[%s5289_s13 + $0x68] sm:$0xff]  }
  0x43   : > { %v454_v17 = vsel %vm330_vm1, %v449_v61, %v453_v3  ;;  %v461_v26 = vrot.slane %v459_v7, 1  ;;  %v475_v37 = vshll.u32 %v5538_v27, 16  ;;  %v2149_v38 = vrot.slane %v5388_v23, 2  ;;  %v5602_v7 = vld [vmem:[%s5289_s13 + $0x78] sm:$0xff]  }
  0x44   : > { %v457_v49 = vor.u32 %v455_v16, %v453_v3  ;;  %v2146_v13 = vsel %vm2137_vm4, %v2143_v53, %v2145_v12  ;;  %v469_v31 = vrot.slane %v467_v22, 1  ;;  %v2151_v18 = vrot.slane %v5408_v44, 2  ;;  %v5618_v22 = vld [vmem:[%s5289_s13 + $0x88] sm:$0xff]  }
  0x45   : > { %4383 = vmatmul.mubr.msk.bf16.gmra.mrb[16].mxu1 %vm479_vm2, %v414_v21  ;;  %v463_v21 = vshrl.u32 %v5508_v56, 16  ;;  %v477_v45 = vrot.slane %v475_v37, 1  ;;  %v2153_v23 = vrot.slane %v5421_v62, 2  ;;  %v2155_v44 = vrot.slane %v5433_v14, 2 }
  0x46   : > { %4386 = vmatprep.mubr.msk.bf16.mxu1 %vm479_vm2, %v422_v24  ;;  %v2147_v24 = vrot.slane %v5364_v59, 2  ;;  %v462_v59 = vsel %vm330_vm1, %v457_v49, %v461_v26  ;;  %v2157_v62 = vrot.slane %v5446_v29, 2  ;;  %v1030_v14 = vsel %vm534_vm0, %v5340_v39, 0 }
  0x47   : > { %v465_v30 = vor.u32 %v463_v21, %v461_v26  ;;  %v2154_v52 = vsel %vm2137_vm4, %v2151_v18, %v2153_v23  ;;  %v2156_v53 = vsel %vm2137_vm4, %v2153_v23, %v2155_v44  ;;  %v2161_v61 = vrot.slane %v5584_v57, 2  ;;  %v5622_v26 = vld [vmem:[%s5289_s13 + $0x90] sm:$0xff]  }
  0x48   : > { %4535 = vmatmul.mubr.msk.bf16.gmra.mrb[16].mxu0 %vm479_vm2, %v1788_v36  ;;  %v2148_v6 = vsel %vm2137_vm4, %v2145_v12, %v2147_v24  ;;  %v471_v36 = vshrl.u32 %v5515_v4, 16  ;;  %v2150_v46 = vsel %vm2137_vm4, %v2147_v24, %v2149_v38  ;;  %v2158_v29 = vsel %vm2137_vm4, %v2155_v44, %v2157_v62  ;;  %v5606_v12 = vld [vmem:[%s5289_s13 + $0x80] sm:$0xff]  }
  0x49   : > { %4556 = vmatprep.mubr.msk.bf16.mxu0 %vm479_vm2, %v2140_v42  ;;  %v470_v42 = vsel %vm330_vm1, %v465_v30, %v469_v31  ;;  %v2165_v16 = vrot.slane %v5602_v7, 2  ;;  %v2169_v49 = vrot.slane %v5618_v22, 2  ;;  %v2445_v30 = vld [vmem:[%s5289_s13 + $0x10] sm:$0xc] }
  0x4d   : > { %4387 = vmatmul.mubr.msk.bf16.gmra.mrb[20].mxu1 %vm479_vm2, %v430_v43  ;;  %v473_v43 = vor.u32 %v471_v36, %v469_v31  ;;  %v5632_v31 = vld [vmem:[%s5289_s13 + $0x14] sm:$0xf] }
  0x4e   : > { %4390 = vmatprep.mubr.msk.bf16.mxu1 %vm479_vm2, %v438_v47  ;;  %v2152_v47 = vsel %vm2137_vm4, %v2149_v38, %v2151_v18  ;;  %v5642_v37 = vcombine.low %v2445_v30, %v5632_v31  ;;  %v5645_v38 = vld [vmem:[%s5289_s13 + $0x18] sm:$0xff]  }
  0x4f   : > { %v478_v50 = vsel %vm330_vm1, %v473_v43, %v477_v45  ;;  %v2578_v43 = vrot.slane %v5645_v38, 2 }
  0x50   : > { %4557 = vmatmul.mubr.msk.bf16.vlgmr.msra.gmra.mrb[0].mxu0 %vm479_vm2, %v2142_v60  ;;  %v5590_v60 = vld [vmem:[%s5289_s13 + $0x70] sm:$0xff]   ;;  %v2577_v18 = vrot.slane %v5642_v37, 2 }
  0x51   : > { %4593 = vmatpush3.bf16.msra.mxu0 %v2669_v28  ;;  %4560 = vmatprep.mubr.msk.bf16.mxu0 %vm479_vm2, %v2144_v5  ;;  %v2159_v28 = vrot.slane %v5565_v55, 2  ;;  %v2163_v3 = vrot.slane %v5590_v60, 2 }
  0x52   : > { %5004 = vmatprep.subr.msk.bf16.mxu0 %vm534_vm0, %v5521_v34 }
  0x53   : > { %v2160_v39 = vsel %vm2137_vm4, %v2157_v62, %v2159_v28  ;;  %v2162_v5 = vsel %vm2137_vm4, %v2159_v28, %v2161_v61  ;;  %v2166_v21 = vsel %vm2137_vm4, %v2163_v3, %v2165_v16  ;;  %v3116_v62 = vsel %vm534_vm0, %v5521_v34, 0  ;;  %v5680_v28 = vld [vmem:[%s5289_s13 + $0x38] sm:$0xff]  }
  0x55   : > { %4391 = vmatmul.mubr.msk.bf16.gmra.mrb[24].mxu1 %vm479_vm2, %v446_v1  ;;  %v2164_v1 = vsel %vm2137_vm4, %v2161_v61, %v2163_v3  ;;  %v2586_v61 = vrot.slane %v5680_v28, 2  ;;  %v5699_v3 = vld [vmem:[%s5289_s13 + $0x40] sm:$0xff]  }
  0x56   : > { %4394 = vmatprep.mubr.msk.bf16.mxu1 %vm479_vm2, %v454_v17  ;;  %v2167_v17 = vrot.slane %v5606_v12, 2 }
  0x58   : > { %4561 = vmatmul.mubr.msk.bf16.gmra.mrb[4].mxu0 %vm479_vm2, %v2146_v13  ;;  %v2168_v24 = vsel %vm2137_vm4, %v2165_v16, %v2167_v17  ;;  %v2171_v13 = vrot.slane %v5622_v26, 2  ;;  %v931_v16 = vld [vmem:[%s5289_s13] sm:$0xe] }
  0x59   : > { %4564 = vmatprep.mubr.msk.bf16.mxu0 %vm479_vm2, %v2148_v6  ;;  %v2170_v6 = vsel %vm2137_vm4, %v2167_v17, %v2169_v49  ;;  %v2588_v17 = vrot.slane %v5699_v3, 2 }
  0x5a   : > { %v2172_v36 = vsel %vm2137_vm4, %v2169_v49, %v2171_v13 }
  0x5b   : > { %v2589_v49 = vsel %vm2137_vm4, %v2586_v61, %v2588_v17 }
  0x5d   : > { %4395 = vmatmul.mubr.msk.bf16.gmra.mrb[28].mxu1 %vm479_vm2, %v462_v59  ;;  %v5638_v59 = vld [vmem:[%s5289_s13 + $0x98] ss:$0 sps:$4 sm:$0x33]  }
  0x5e   : > { %4398 = vmatprep.mubr.msk.bf16.mxu1 %vm479_vm2, %v470_v42  ;;  %v2173_v42 = vrot.slane %v5638_v59, 2 }
  0x60   : > { %4565 = vmatmul.mubr.msk.bf16.gmra.mrb[8].mxu0 %vm479_vm2, %v2150_v46  ;;  %v2174_v45 = vsel %vm2137_vm4, %v2171_v13, %v2173_v42  ;;  %v5658_v46 = vld [vmem:[%s5289_s13 + $0x20] sm:$0xff]   ;;  %v5717_v13 = vld [vmem:[%s5289_s13 + $0x50] sm:$0xff]  }
  0x61   : > { %4568 = vmatprep.mubr.msk.bf16.mxu0 %vm479_vm2, %v2152_v47  ;;  %v2579_v47 = vsel %vm2137_vm4, %v2577_v18, %v2578_v43  ;;  %v2580_v23 = vrot.slane %v5658_v46, 2  ;;  %v2592_v42 = vrot.slane %v5717_v13, 2 }
  0x65   : > { %4399 = vmatmul.mubr.msk.bf16.gmra.mrb[32].mxu1 %vm479_vm2, %v478_v50  ;;  %v5662_v50 = vld [vmem:[%s5289_s13 + $0x28] sm:$0xff]  }
  0x66   : > { %4404 = vmatprep.mubr.msk.bf16.mxu1 %vm479_vm2, %v5299_v9  ;;  %v5576_v9 = vld [vmem:[%s6289_s1 + $0xc] sm:$0xf]  ;;  %v2582_v44 = vrot.slane %v5662_v50, 2 }
  0x68   : > { %4569 = vmatmul.mubr.msk.bf16.gmra.mrb[12].mxu0 %vm479_vm2, %v2154_v52  ;;  %v2581_v52 = vsel %vm2137_vm4, %v2578_v43, %v2580_v23 }
  0x69   : > { %4572 = vmatprep.mubr.msk.bf16.mxu0 %vm479_vm2, %v2156_v53  ;;  %v5674_v53 = vld [vmem:[%s5289_s13 + $0x30] sm:$0xff]  }
  0x6d   : > { %4405 = vmatmul.mubr.msk.bf16.vlgmr.msra.gmra.mrb[0].mxu1 %vm479_vm2, %v5302_v10 }
  0x6e   : > { %4408 = vmatprep.mubr.msk.bf16.mxu1 %vm479_vm2, %v5317_v19  ;;  %4441 = vmatpush3.bf16.msra.mxu1 %v1030_v14  ;;  %v2583_v14 = vsel %vm2137_vm4, %v2580_v23, %v2582_v44  ;;  %v943_v23 = vrot.slane %v5331_v33, 1 }
  0x6f   : > { %4999 = vmatprep.subr.msk.bf16.mxu1 %vm534_vm0, %v5576_v9 }
  0x70   : > { %4573 = vmatmul.mubr.msk.bf16.gmra.mrb[16].mxu0 %vm479_vm2, %v2158_v29  ;;  %v5685_v29 = vld [vmem:[%s6289_s1 + $0x20] sm:$0xf] }
  0x71   : > { %4576 = vmatprep.mubr.msk.bf16.mxu0 %vm479_vm2, %v2160_v39  ;;  %v2584_v39 = vrot.slane %v5674_v53, 2 }
  0x73   : > { %v2585_v34 = vsel %vm2137_vm4, %v2582_v44, %v2584_v39 }
  0x75   : > { %4409 = vmatmul.mubr.msk.bf16.gmra.mrb[4].mxu1 %vm479_vm2, %v5331_v33 }
  0x76   : > { %4412 = vmatprep.mubr.msk.bf16.mxu1 %vm479_vm2, %v5349_v48 }
  0x78   : > { %4577 = vmatmul.mubr.msk.bf16.gmra.mrb[20].mxu0 %vm479_vm2, %v2162_v5  ;;  %v2587_v5 = vsel %vm2137_vm4, %v2584_v39, %v2586_v61  ;;  %v1469_v39 = vsel %vm534_vm0, %v5576_v9, 0  ;;  %v945_v61 = vrot.slane %v5349_v48, 1  ;;  %v5112_v9 = vld [vmem:[%s6289_s1 + $0x10] sm:$0xf] }
  0x79   : > { %4580 = vmatprep.mubr.msk.bf16.mxu0 %vm479_vm2, %v2164_v1  ;;  %v5703_v1 = vld [vmem:[%s5289_s13 + $0x48] sm:$0xff]  }
  0x7a   : > { %v946_v48 = vsel %vm937_vm5, %v943_v23, %v945_v61 }
  0x7d   : > { %4413 = vmatmul.mubr.msk.bf16.gmra.mrb[8].mxu1 %vm479_vm2, %v5358_v54 }
  0x7e   : > { %4416 = vmatprep.mubr.msk.bf16.mxu1 %vm479_vm2, %v5369_v0 }
  0x80   : > { %4581 = vmatmul.mubr.msk.bf16.gmra.mrb[24].mxu0 %vm479_vm2, %v2166_v21  ;;  %v4013_v21 = vcombine.low %v931_v16, %v5296_v8  ;;  %v5722_v8 = vld [vmem:[%s5289_s13 + $0x58] sm:$0xff]   ;;  %v947_v16 = vrot.slane %v5358_v54, 1 }
  0x81   : > { %4584 = vmatprep.mubr.msk.bf16.mxu0 %vm479_vm2, %v2168_v24  ;;  %v2590_v24 = vrot.slane %v5703_v1, 2  ;;  %v2594_v43 = vrot.slane %v5722_v8, 2 }
  0x82   : > { %v938_v30 = vrot.slane %v4013_v21, 1  ;;  %v5764_v21 = vld [vmem:[%s5289_s13 + $0x78] sm:$0xff]   ;;  %v948_v54 = vsel %vm937_vm5, %v945_v61, %v947_v16 }
  0x83   : > { %v2595_v44 = vsel %vm2137_vm4, %v2592_v42, %v2594_v43 }
  0x85   : > { %4417 = vmatmul.mubr.msk.bf16.gmra.mrb[12].mxu1 %vm479_vm2, %v5397_v35 }
  0x86   : > { %4420 = vmatprep.mubr.msk.bf16.mxu1 %vm479_vm2, %v5413_v51 }
  0x88   : > { %4585 = vmatmul.mubr.msk.bf16.gmra.mrb[28].mxu0 %vm479_vm2, %v2170_v6  ;;  %v939_v6 = vrot.slane %v5302_v10, 1  ;;  %v941_v10 = vrot.slane %v5317_v19, 1 }
  0x89   : > { %4588 = vmatprep.mubr.msk.bf16.mxu0 %vm479_vm2, %v2172_v36  ;;  %v2591_v36 = vsel %vm2137_vm4, %v2588_v17, %v2590_v24 }
  0x8a   : > { %v940_v18 = vsel %vm937_vm5, %v938_v30, %v939_v6  ;;  %v949_v30 = vrot.slane %v5369_v0, 1 }
  0x8d   : > { %4421 = vmatmul.mubr.msk.bf16.gmra.mrb[16].mxu1 %vm479_vm2, %v5424_v63 }
  0x8e   : > { %4424 = vmatprep.mubr.msk.bf16.mxu1 %vm479_vm2, %v5441_v25 }
  0x90   : > { %4589 = vmatmul.mubr.msk.bf16.gmra.mrb[32].mxu0 %vm479_vm2, %v2174_v45  ;;  %v2593_v45 = vsel %vm2137_vm4, %v2590_v24, %v2592_v42  ;;  %v951_v42 = vrot.slane %v5397_v35, 1  ;;  %v953_v35 = vrot.slane %v5413_v51, 1 }
  0x91   : > { %4594 = vmatprep.mubr.msk.bf16.mxu0 %vm479_vm2, %v2579_v47  ;;  %v5735_v47 = vld [vmem:[%s5289_s13 + $0x60] sm:$0xff]  }
  0x92   : > { %v2596_v19 = vrot.slane %v5735_v47, 2 }
  0x95   : > { %4425 = vmatmul.mubr.msk.bf16.gmra.mrb[20].mxu1 %vm479_vm2, %v5451_v41 }
  0x96   : > { %4428 = vmatprep.mubr.msk.bf16.mxu1 %vm479_vm2, %v5465_v58 }
  0x98   : > { %4595 = vmatmul.mubr.msk.bf16.vlgmr.msra.gmra.mrb[0].mxu0 %vm479_vm2, %v2581_v52  ;;  %v5740_v52 = vld [vmem:[%s5289_s13 + $0x68] sm:$0xff]  }
  0x99   : > { %4631 = vmatpush3.bf16.msra.mxu0 %v3116_v62  ;;  %4598 = vmatprep.mubr.msk.bf16.mxu0 %vm479_vm2, %v2583_v14  ;;  %v942_v62 = vsel %vm937_vm5, %v939_v6, %v941_v10  ;;  %v944_v14 = vsel %vm937_vm5, %v941_v10, %v943_v23  ;;  %v2598_v33 = vrot.slane %v5740_v52, 2  ;;  %v950_v10 = vsel %vm937_vm5, %v947_v16, %v949_v30 }
  0x9a   : > { %5005 = vmatprep.subr.msk.bf16.mxu0 %vm534_vm0, %v5685_v29  ;;  %v2892_v16 = vshrl.u32 %v5642_v37, 16 }
  0x9b   : > { %v2599_v17 = vsel %vm2137_vm4, %v2596_v19, %v2598_v33 }
  0x9d   : > { %4429 = vmatmul.mubr.msk.bf16.gmra.mrb[24].mxu1 %vm479_vm2, %v5470_v11 }
  0x9e   : > { %4432 = vmatprep.mubr.msk.bf16.mxu1 %vm479_vm2, %v5487_v32 }
  0xa0   : > { %4599 = vmatmul.mubr.msk.bf16.gmra.mrb[4].mxu0 %vm479_vm2, %v2585_v34  ;;  %v2597_v34 = vsel %vm2137_vm4, %v2594_v43, %v2596_v19  ;;  %v5782_v43 = vld [vmem:[%s5289_s13 + $0x88] sm:$0xff]   ;;  %v955_v19 = vrot.slane %v5424_v63, 1  ;;  %v2895_v63 = vshll.u32 %v5642_v37, 16 }
  0xa1   : > { %4602 = vmatprep.mubr.msk.bf16.mxu0 %vm479_vm2, %v2587_v5  ;;  %v5755_v5 = vld [vmem:[%s5289_s13 + $0x70] sm:$0xff]   ;;  %v2606_v23 = vrot.slane %v5782_v43, 2 }
  0xa2   : > { %v2600_v24 = vrot.slane %v5755_v5, 2  ;;  %v956_v51 = vsel %vm937_vm5, %v953_v35, %v955_v19 }
  0xa4   : > { %v2601_v6 = vsel %vm2137_vm4, %v2598_v33, %v2600_v24  ;;  %v954_v33 = vsel %vm937_vm5, %v951_v42, %v953_v35 }
  0xa5   : > { %4433 = vmatmul.mubr.msk.bf16.gmra.mrb[28].mxu1 %vm479_vm2, %v5493_v40 }
  0xa6   : > { %4436 = vmatprep.mubr.msk.bf16.mxu1 %vm479_vm2, %v5508_v56 }
  0xa8   : > { %4603 = vmatmul.mubr.msk.bf16.gmra.mrb[8].mxu0 %vm479_vm2, %v2589_v49  ;;  %v2602_v49 = vrot.slane %v5764_v21, 2 }
  0xa9   : > { %4606 = vmatprep.mubr.msk.bf16.mxu0 %vm479_vm2, %v2591_v36  ;;  %v5777_v36 = vld [vmem:[%s5289_s13 + $0x80] sm:$0xff]  }
  0xaa   : > { %v2604_v0 = vrot.slane %v5777_v36, 2 }
  0xad   : > { %4437 = vmatmul.mubr.msk.bf16.gmra.mrb[32].mxu1 %vm479_vm2, %v5515_v4 }
  0xae   : > { %4442 = vmatprep.mubr.msk.bf16.mxu1 %vm479_vm2, %v940_v18  ;;  %v2603_v18 = vsel %vm2137_vm4, %v2600_v24, %v2602_v49 }
  0xb0   : > { %4607 = vmatmul.mubr.msk.bf16.gmra.mrb[12].mxu0 %vm479_vm2, %v2593_v45  ;;  %v952_v45 = vsel %vm937_vm5, %v949_v30, %v951_v42  ;;  %v959_v30 = vrot.slane %v5451_v41, 1  ;;  %v2897_v42 = vrot.slane %v2895_v63, 3  ;;  %v2918_v41 = vshrl.u32 %v5662_v50, 16 }
  0xb1   : > { %4610 = vmatprep.mubr.msk.bf16.mxu0 %vm479_vm2, %v2595_v44  ;;  %v2605_v44 = vsel %vm2137_vm4, %v2602_v49, %v2604_v0  ;;  %v5108_v49 = vld [vmem:[%s5289_s13 + $0xa0] ss:$0 sps:$4 sm:$0x33]  }
  0xb5   : > { %4443 = vmatmul.mubr.msk.bf16.vlgmr.msra.gmra.mrb[0].mxu1 %vm479_vm2, %v942_v62  ;;  %v5795_v62 = vld [vmem:[%s5289_s13 + $0x90] sm:$0xff]  }
  0xb6   : > { %4446 = vmatprep.mubr.msk.bf16.mxu1 %vm479_vm2, %v944_v14  ;;  %4479 = vmatpush3.bf16.msra.mxu1 %v1469_v39  ;;  %v5799_v14 = vld [vmem:[%s5289_s13 + $0x98] sm:$0xff]   ;;  %v2607_v39 = vsel %vm2137_vm4, %v2604_v0, %v2606_v23  ;;  %v2608_v61 = vrot.slane %v5795_v62, 2  ;;  %v2612_v0 = vrot.slane %v5108_v49, 2 }
  0xb7   : > { %5001 = vmatprep.subr.msk.bf16.mxu1 %vm534_vm0, %v5112_v9  ;;  %v2900_v9 = vshrl.u32 %v5645_v38, 16 }
  0xb8   : > { %4611 = vmatmul.mubr.msk.bf16.gmra.mrb[16].mxu0 %vm479_vm2, %v2597_v34  ;;  %v2610_v34 = vrot.slane %v5799_v14, 2  ;;  %v2609_v24 = vsel %vm2137_vm4, %v2606_v23, %v2608_v61  ;;  %v2912_v23 = vshll.u32 %v5658_v46, 16 }
  0xb9   : > { %4614 = vmatprep.mubr.msk.bf16.mxu0 %vm479_vm2, %v2599_v17  ;;  %v2903_v17 = vshll.u32 %v5645_v38, 16  ;;  %v2902_v37 = vrot.slane %v2900_v9, 2  ;;  %v2920_v9 = vrot.slane %v2918_v41, 2  ;;  %v2945_v41 = vshrl.u32 %v5699_v3, 16 }
  0xbd   : > { %4447 = vmatmul.mubr.msk.bf16.gmra.mrb[4].mxu1 %vm479_vm2, %v946_v48  ;;  %v957_v48 = vrot.slane %v5441_v25, 1 }
  0xbe   : > { %4450 = vmatprep.mubr.msk.bf16.mxu1 %vm479_vm2, %v948_v54  ;;  %v2611_v54 = vsel %vm2137_vm4, %v2608_v61, %v2610_v34 }
  0xbf   : > { %v960_v25 = vsel %vm937_vm5, %v957_v48, %v959_v30 }
  0xc0   : > { %4615 = vmatmul.mubr.msk.bf16.gmra.mrb[20].mxu0 %vm479_vm2, %v2601_v6  ;;  %v2894_v6 = vrot.slane %v2892_v16, 2  ;;  %v963_v16 = vrot.slane %v5470_v11, 1  ;;  %v2936_v11 = vshrl.u32 %v5680_v28, 16 }
  0xc1   : > { %4618 = vmatprep.mubr.msk.bf16.mxu0 %vm479_vm2, %v2603_v18  ;;  %v2905_v18 = vrot.slane %v2903_v17, 3 }
  0xc2   : > { %v2898_v35 = vor.u32 %v2897_v42, %v2894_v6  ;;  %v2939_v6 = vshll.u32 %v5680_v28, 16 }
  0xc5   : > { %4451 = vmatmul.mubr.msk.bf16.gmra.mrb[8].mxu1 %vm479_vm2, %v950_v10  ;;  %v958_v10 = vsel %vm937_vm5, %v955_v19, %v957_v48  ;;  %v961_v19 = vrot.slane %v5465_v58, 1  ;;  %v2927_v58 = vshrl.u32 %v5674_v53, 16 }
  0xc6   : > { %4454 = vmatprep.mubr.msk.bf16.mxu1 %vm479_vm2, %v952_v45  ;;  %v2909_v45 = vshrl.u32 %v5658_v46, 16 }
  0xc7   : > { %v962_v48 = vsel %vm937_vm5, %v959_v30, %v961_v19  ;;  %v965_v30 = vrot.slane %v5487_v32, 1  ;;  %v2948_v32 = vshll.u32 %v5699_v3, 16 }
  0xc8   : > { %4619 = vmatmul.mubr.msk.bf16.gmra.mrb[24].mxu0 %vm479_vm2, %v2605_v44  ;;  %v2906_v44 = vor.u32 %v2905_v18, %v2902_v37  ;;  %v2911_v61 = vrot.slane %v2909_v45, 2  ;;  %v2929_v37 = vrot.slane %v2927_v58, 2  ;;  %v2938_v45 = vrot.slane %v2936_v11, 2 }
  0xc9   : > { %4622 = vmatprep.mubr.msk.bf16.mxu0 %vm479_vm2, %v2607_v39  ;;  %v2921_v39 = vshll.u32 %v5662_v50, 16  ;;  %v2963_v58 = vshrl.u32 %v5717_v13, 16  ;;  %v2975_v11 = vshll.u32 %v5722_v8, 16 }
  0xca   : > { %v2907_v63 = vsel %vm2890_vm6, %v2898_v35, %v2906_v44  ;;  %v966_v35 = vsel %vm937_vm5, %v963_v16, %v965_v30 }
  0xcb   : > { %v2923_v17 = vrot.slane %v2921_v39, 3 }
  0xcd   : > { %4455 = vmatmul.mubr.msk.bf16.gmra.mrb[12].mxu1 %vm479_vm2, %v954_v33  ;;  %v2613_v33 = vsel %vm2137_vm4, %v2610_v34, %v2612_v0  ;;  %v2930_v34 = vshll.u32 %v5674_v53, 16  ;;  %v2924_v49 = vor.u32 %v2923_v17, %v2920_v9  ;;  %v3430_v0 = vsel %vm534_vm0, %v5685_v29, 0 }
  0xce   : > { %4458 = vmatprep.mubr.msk.bf16.mxu1 %vm479_vm2, %v956_v51  ;;  %v2914_v51 = vrot.slane %v2912_v23, 3  ;;  %v2941_v23 = vrot.slane %v2939_v6, 3  ;;  %v2954_v29 = vshrl.u32 %v5703_v1, 16 }
  0xcf   : > { %v2932_v18 = vrot.slane %v2930_v34, 3  ;;  %v2966_v34 = vshll.u32 %v5717_v13, 16 }
  0xd0   : > { %4623 = vmatmul.mubr.msk.bf16.gmra.mrb[28].mxu0 %vm479_vm2, %v2609_v24  ;;  %v2915_v24 = vor.u32 %v2914_v51, %v2911_v61  ;;  %v2942_v39 = vor.u32 %v2941_v23, %v2938_v45  ;;  %v2947_v61 = vrot.slane %v2945_v41, 2  ;;  %v2950_v51 = vrot.slane %v2948_v32, 3 }
  0xd1   : > { %4626 = vmatprep.mubr.msk.bf16.mxu0 %vm479_vm2, %v2611_v54  ;;  %v964_v54 = vsel %vm937_vm5, %v961_v19, %v963_v16  ;;  %v2957_v19 = vshll.u32 %v5703_v1, 16  ;;  %v2956_v17 = vrot.slane %v2954_v29, 2  ;;  %v2977_v23 = vrot.slane %v2975_v11, 3  ;;  %v5114_v29 = vld [vmem:[%s5289_s13 + $0x18] sm:$0xff]  }
  0xd2   : > { %v2916_v42 = vsel %vm2890_vm6, %v2906_v44, %v2915_v24  ;;  %v2933_v44 = vor.u32 %v2932_v18, %v2929_v37  ;;  %v2968_v37 = vrot.slane %v2966_v34, 3  ;;  %v1377_v18 = vrot.slane %v5320_v20, 1 }
  0xd3   : > { %v2981_v32 = vshrl.u32 %v5735_v47, 16  ;;  %v2984_v20 = vshll.u32 %v5735_v47, 16  ;;  %v3002_v34 = vshll.u32 %v5755_v5, 16  ;;  %v3011_v11 = vshll.u32 %v5764_v21, 16 }
  0xd4   : > { %v2934_v16 = vsel %vm2890_vm6, %v2924_v49, %v2933_v44  ;;  %v2943_v9 = vsel %vm2890_vm6, %v2933_v44, %v2942_v39 }
  0xd5   : > { %4459 = vmatmul.mubr.msk.bf16.gmra.mrb[16].mxu1 %vm479_vm2, %v958_v10  ;;  %v967_v10 = vrot.slane %v5493_v40, 1 }
  0xd6   : > { %4462 = vmatprep.mubr.msk.bf16.mxu1 %vm479_vm2, %v960_v25  ;;  %v2925_v25 = vsel %vm2890_vm6, %v2915_v24, %v2924_v49 }
  0xd7   : > { %v968_v40 = vsel %vm937_vm5, %v965_v30, %v967_v10  ;;  %v973_v30 = vrot.slane %v5538_v27, 1 }
  0xd8   : > { %4627 = vmatmul.mubr.msk.bf16.gmra.mrb[32].mxu0 %vm479_vm2, %v2613_v33  ;;  %v969_v33 = vrot.slane %v5508_v56, 1 }
  0xd9   : > { %4632 = vmatprep.mubr.msk.bf16.mxu0 %vm479_vm2, %v2907_v63  ;;  %v971_v63 = vrot.slane %v5515_v4, 1  ;;  %v2972_v4 = vshrl.u32 %v5722_v8, 16 }
  0xda   : > { %v970_v24 = vsel %vm937_vm5, %v967_v10, %v969_v33  ;;  %v5113_v10 = vld [vmem:[%s5289_s13 + $0x10] sm:$0xff]  }
  0xdb   : > { %v972_v56 = vsel %vm937_vm5, %v969_v33, %v971_v63  ;;  %v2974_v45 = vrot.slane %v2972_v4, 2  ;;  %v3008_v4 = vshrl.u32 %v5764_v21, 16 }
  0xdd   : > { %4463 = vmatmul.mubr.msk.bf16.gmra.mrb[20].mxu1 %vm479_vm2, %v962_v48  ;;  %v2959_v48 = vrot.slane %v2957_v19, 3  ;;  %v2978_v44 = vor.u32 %v2977_v23, %v2974_v45  ;;  %v1380_v19 = vrot.slane %v5114_v29, 1  ;;  %v3010_v45 = vrot.slane %v3008_v4, 2 }
  0xde   : > { %4466 = vmatprep.mubr.msk.bf16.mxu1 %vm479_vm2, %v964_v54  ;;  %v2951_v54 = vor.u32 %v2950_v51, %v2947_v61  ;;  %v2983_v61 = vrot.slane %v2981_v32, 2  ;;  %v2986_v51 = vrot.slane %v2984_v20, 3  ;;  %v3013_v23 = vrot.slane %v3011_v11, 3  ;;  %v5120_v11 = vld [vmem:[%s5289_s13 + $0x48] sm:$0xff]  }
  0xdf   : > { %v2960_v49 = vor.u32 %v2959_v48, %v2956_v17  ;;  %v3020_v32 = vshll.u32 %v5777_v36, 16  ;;  %v3047_v4 = vshll.u32 %v5799_v14, 16 }
  0xe0   : > { %4633 = vmatmul.mubr.msk.bf16.vlgmr.msra.gmra.mrb[0].mxu0 %vm479_vm2, %v2916_v42  ;;  %v2952_v6 = vsel %vm2890_vm6, %v2942_v39, %v2951_v54  ;;  %v2965_v42 = vrot.slane %v2963_v58, 2  ;;  %v2993_v39 = vshll.u32 %v5740_v52, 16  ;;  %v2999_v58 = vshrl.u32 %v5755_v5, 16 }
  0xe1   : > { %4669 = vmatpush3.bf16.msra.mxu0 %v3430_v0  ;;  %4636 = vmatprep.mubr.msk.bf16.mxu0 %vm479_vm2, %v2925_v25  ;;  %v1378_v0 = vrot.slane %v5113_v10, 1  ;;  %v2961_v25 = vsel %vm2890_vm6, %v2951_v54, %v2960_v49  ;;  %v2987_v54 = vor.u32 %v2986_v51, %v2983_v61  ;;  %v5117_v10 = vld [vmem:[%s5289_s13 + $0x30] sm:$0xff]   ;;  %v3014_v20 = vor.u32 %v3013_v23, %v3010_v45  ;;  %v5119_v51 = vld [vmem:[%s5289_s13 + $0x40] sm:$0xff]  }
  0xe2   : > { %v2969_v41 = vor.u32 %v2968_v37, %v2965_v42  ;;  %v2995_v48 = vrot.slane %v2993_v39, 3  ;;  %v3001_v37 = vrot.slane %v2999_v58, 2  ;;  %v5118_v39 = vld [vmem:[%s5289_s13 + $0x38] sm:$0xff]   ;;  %v3022_v61 = vrot.slane %v3020_v32, 3 }
  0xe3   : > { %v1379_v27 = vsel %vm937_vm5, %v1377_v18, %v1378_v0  ;;  %v2988_v42 = vsel %vm2890_vm6, %v2978_v44, %v2987_v54  ;;  %v3004_v18 = vrot.slane %v3002_v34, 3  ;;  %v1388_v29 = vrot.slane %v5118_v39, 1 }
  0xe4   : > { %v2970_v33 = vsel %vm2890_vm6, %v2960_v49, %v2969_v41  ;;  %v3038_v58 = vshll.u32 %v5795_v62, 16  ;;  %v3049_v23 = vrot.slane %v3047_v4, 3  ;;  %v3343_v4 = vrot.slane %v5662_v50, 3 }
  0xe5   : > { %4467 = vmatmul.mubr.msk.bf16.gmra.mrb[24].mxu1 %vm479_vm2, %v966_v35  ;;  %v974_v35 = vsel %vm937_vm5, %v971_v63, %v973_v30  ;;  %v3345_v50 = vrot.slane %v5674_v53, 3 }
  0xe6   : > { %4470 = vmatprep.mubr.msk.bf16.mxu1 %vm479_vm2, %v968_v40  ;;  %v2990_v40 = vshrl.u32 %v5740_v52, 16 }
  0xe8   : > { %4637 = vmatmul.mubr.msk.bf16.gmra.mrb[4].mxu0 %vm479_vm2, %v2934_v16  ;;  %v5115_v16 = vld [vmem:[%s5289_s13 + $0x20] sm:$0xff]   ;;  %v2992_v17 = vrot.slane %v2990_v40, 2  ;;  %v3029_v40 = vshll.u32 %v5782_v43, 16 }
  0xe9   : > { %4640 = vmatprep.mubr.msk.bf16.mxu0 %vm479_vm2, %v2943_v9  ;;  %v1382_v63 = vrot.slane %v5115_v16, 1  ;;  %v2979_v9 = vsel %vm2890_vm6, %v2969_v41, %v2978_v44  ;;  %v3005_v41 = vor.u32 %v3004_v18, %v3001_v37  ;;  %v3026_v44 = vshrl.u32 %v5782_v43, 16  ;;  %v5121_v18 = vld [vmem:[%s5289_s13 + $0x50] sm:$0xff]  }
  0xea   : > { %v2996_v49 = vor.u32 %v2995_v48, %v2992_v17  ;;  %v1390_v16 = vrot.slane %v5119_v51, 1  ;;  %v3031_v17 = vrot.slane %v3029_v40, 3  ;;  %v3040_v37 = vrot.slane %v3038_v58, 3  ;;  %v5122_v40 = vld [vmem:[%s5289_s13 + $0x58] sm:$0xff]  }
  0xeb   : > { %v1396_v39 = vrot.slane %v5122_v40, 1  ;;  %v1799_v40 = vshrl.u32 %v5584_v57, 16 }
  0xed   : > { %4471 = vmatmul.mubr.msk.bf16.gmra.mrb[28].mxu1 %vm479_vm2, %v970_v24  ;;  %v1381_v24 = vsel %vm937_vm5, %v1378_v0, %v1380_v19  ;;  %v1386_v0 = vrot.slane %v5117_v10, 1  ;;  %v1394_v10 = vrot.slane %v5121_v18, 1  ;;  %v3347_v18 = vrot.slane %v5680_v28, 3 }
  0xee   : > { %4474 = vmatprep.mubr.msk.bf16.mxu1 %vm479_vm2, %v972_v56  ;;  %v1383_v56 = vsel %vm937_vm5, %v1380_v19, %v1382_v63  ;;  %v3006_v19 = vsel %vm2890_vm6, %v2996_v49, %v3005_v41 }
  0xef   : > { %v1389_v48 = vsel %vm937_vm5, %v1386_v0, %v1388_v29  ;;  %v3348_v53 = vsel %vm3337_vm7, %v3345_v50, %v3347_v18 }
  0xf0   : > { %4641 = vmatmul.mubr.msk.bf16.gmra.mrb[8].mxu0 %vm479_vm2, %v2952_v6  ;;  %v5116_v6 = vld [vmem:[%s5289_s13 + $0x28] sm:$0xff]  }
  0xf1   : > { %4644 = vmatprep.mubr.msk.bf16.mxu0 %vm479_vm2, %v2961_v25  ;;  %v1384_v30 = vrot.slane %v5116_v6, 1  ;;  %v2997_v25 = vsel %vm2890_vm6, %v2987_v54, %v2996_v49  ;;  %v1391_v54 = vsel %vm937_vm5, %v1388_v29, %v1390_v16  ;;  %v3044_v49 = vshrl.u32 %v5799_v14, 16 }
  0xf2   : > { %v1392_v6 = vrot.slane %v5120_v11, 1  ;;  %v1404_v11 = vrot.slane %v5602_v7, 1 }
  0xf3   : > { %v3046_v45 = vrot.slane %v3044_v49, 2 }
  0xf5   : > { %4475 = vmatmul.mubr.msk.bf16.gmra.mrb[32].mxu1 %vm479_vm2, %v974_v35  ;;  %v1385_v35 = vsel %vm937_vm5, %v1382_v63, %v1384_v30  ;;  %v3015_v63 = vsel %vm2890_vm6, %v3005_v41, %v3014_v20 }
  0xf6   : > { %4480 = vmatprep.mubr.msk.bf16.mxu1 %vm479_vm2, %v1379_v27  ;;  %v3017_v27 = vshrl.u32 %v5777_v36, 16 }
  0xf8   : > { %4645 = vmatmul.mubr.msk.bf16.gmra.mrb[12].mxu0 %vm479_vm2, %v2970_v33  ;;  %v3019_v33 = vrot.slane %v3017_v27, 2 }
  0xf9   : > { %4648 = vmatprep.mubr.msk.bf16.mxu0 %vm479_vm2, %v2979_v9  ;;  %v3028_v9 = vrot.slane %v3026_v44, 2  ;;  %v3331_v44 = vld [vmem:[%s5289_s13 + $0x10] sm:$0x8] }
  0xfb   : > { %v3032_v34 = vor.u32 %v3031_v17, %v3028_v9 }
  0xfd   : > { %4481 = vmatmul.mubr.msk.bf16.vlgmr.msra.gmra.mrb[0].mxu1 %vm479_vm2, %v1381_v24  ;;  %v3023_v24 = vor.u32 %v3022_v61, %v3019_v33  ;;  %v1398_v61 = vrot.slane %v5565_v55, 1 }
  0xfe   : > { %4484 = vmatprep.mubr.msk.bf16.mxu1 %vm479_vm2, %v1383_v56  ;;  %4707 = vmatpush3.bf16.msra.mxu1 %v5273_v2  ;;  %v1387_v2 = vsel %vm937_vm5, %v1384_v30, %v1386_v0  ;;  %v3035_v56 = vshrl.u32 %v5795_v62, 16  ;;  %v5935_v0 = vld [vmem:[%s5289_s13 + $0xa0] ss:$0 sps:$4 sm:$0x77]  }
  0xff   : > { %v3024_v30 = vsel %vm2890_vm6, %v3014_v20, %v3023_v24  ;;  %v3053_v27 = vshrl.u32 %v5935_v0, 16  ;;  %v3056_v32 = vshll.u32 %v5935_v0, 16  ;;  %v3050_v20 = vor.u32 %v3049_v23, %v3046_v45 }
 0x100   : > { %4649 = vmatmul.mubr.msk.bf16.gmra.mrb[16].mxu0 %vm479_vm2, %v2988_v42  ;;  %v3037_v42 = vrot.slane %v3035_v56, 2  ;;  %v1399_v17 = vsel %vm937_vm5, %v1396_v39, %v1398_v61  ;;  %v1402_v56 = vrot.slane %v5590_v60, 1  ;;  %v1410_v45 = vrot.slane %v5622_v26, 1 }
 0x101   : > { %4652 = vmatprep.mubr.msk.bf16.mxu0 %vm479_vm2, %v2997_v25  ;;  %v3033_v25 = vsel %vm2890_vm6, %v3023_v24, %v3032_v34  ;;  %v3058_v33 = vrot.slane %v3056_v32, 3  ;;  %v3339_v24 = vrot.slane %v5645_v38, 3  ;;  %v3341_v38 = vrot.slane %v5658_v46, 3 }
 0x102   : > { %v3041_v41 = vor.u32 %v3040_v37, %v3037_v42  ;;  %v1405_v46 = vsel %vm937_vm5, %v1402_v56, %v1404_v11  ;;  %v1790_v23 = vshrl.u32 %v5565_v55, 16 }
 0x103   : > { %v3344_v42 = vsel %vm3337_vm7, %v3341_v38, %v3343_v4 }
 0x104   : > { %v3042_v29 = vsel %vm2890_vm6, %v3032_v34, %v3041_v41  ;;  %v3051_v51 = vsel %vm2890_vm6, %v3041_v41, %v3050_v20  ;;  %v5111_v41 = vld [vmem:[%s5289_s13 + $0x98] ss:$0 sps:$4 sm:$0x11]   ;;  %v1792_v32 = vrot.slane %v1790_v23, 1 }
 0x105   : > { %4485 = vmatmul.mubr.msk.bf16.gmra.mrb[4].mxu1 %vm479_vm2, %v1385_v35  ;;  %v1393_v35 = vsel %vm937_vm5, %v1390_v16, %v1392_v6  ;;  %v4169_v16 = vcombine.low %v3331_v44, %v5632_v31  ;;  %v3351_v44 = vrot.slane %v5703_v1, 3 }
 0x106   : > { %4488 = vmatprep.mubr.msk.bf16.mxu1 %vm479_vm2, %v1387_v2  ;;  %v1395_v2 = vsel %vm937_vm5, %v1392_v6, %v1394_v10  ;;  %v3342_v6 = vsel %vm3337_vm7, %v3339_v24, %v3341_v38 }
 0x108   : > { %4653 = vmatmul.mubr.msk.bf16.gmra.mrb[20].mxu0 %vm479_vm2, %v3006_v19  ;;  %v3055_v19 = vrot.slane %v3053_v27, 2 }
 0x109   : > { %4656 = vmatprep.mubr.msk.bf16.mxu0 %vm479_vm2, %v3015_v63  ;;  %v1397_v63 = vsel %vm937_vm5, %v1394_v10, %v1396_v39  ;;  %v1408_v10 = vrot.slane %v5618_v22, 1  ;;  %v1802_v39 = vshll.u32 %v5584_v57, 16 }
 0x10a   : > { %v3059_v9 = vor.u32 %v3058_v33, %v3055_v19  ;;  %v1811_v33 = vshll.u32 %v5590_v60, 16 }
 0x10b   : > { %v1411_v27 = vsel %vm937_vm5, %v1408_v10, %v1410_v45 }
 0x10c   : > { %v3060_v31 = vsel %vm2890_vm6, %v3050_v20, %v3059_v9 }
 0x10d   : > { %4489 = vmatmul.mubr.msk.bf16.gmra.mrb[8].mxu1 %vm479_vm2, %v1389_v48  ;;  %v3338_v48 = vrot.slane %v4169_v16, 3  ;;  %v1804_v16 = vrot.slane %v1802_v39, 2 }
 0x10e   : > { %4492 = vmatprep.mubr.msk.bf16.mxu1 %vm479_vm2, %v1391_v54  ;;  %v1400_v54 = vrot.slane %v5584_v57, 1 }
 0x10f   : > { %v3340_v58 = vsel %vm3337_vm7, %v3338_v48, %v3339_v24  ;;  %v3355_v48 = vrot.slane %v5722_v8, 3  ;;  %v1817_v24 = vshrl.u32 %v5602_v7, 16 }
 0x110   : > { %4657 = vmatmul.mubr.msk.bf16.gmra.mrb[24].mxu0 %vm479_vm2, %v3024_v30  ;;  %v1401_v34 = vsel %vm937_vm5, %v1398_v61, %v1400_v54  ;;  %v1403_v49 = vsel %vm937_vm5, %v1400_v54, %v1402_v56  ;;  %v1406_v30 = vrot.slane %v5606_v12, 1  ;;  %v1820_v54 = vshll.u32 %v5602_v7, 16 }
 0x111   : > { %4660 = vmatprep.mubr.msk.bf16.mxu0 %vm479_vm2, %v3033_v25  ;;  %v3346_v25 = vsel %vm3337_vm7, %v3343_v4, %v3345_v50 }
 0x112   : > { %v1407_v37 = vsel %vm937_vm5, %v1404_v11, %v1406_v30  ;;  %v1409_v28 = vsel %vm937_vm5, %v1406_v30, %v1408_v10  ;;  %v1822_v38 = vrot.slane %v1820_v54, 2  ;;  %v1835_v30 = vshrl.u32 %v5618_v22, 16 }
 0x114   : > { %v1837_v10 = vrot.slane %v1835_v30, 1 }
 0x115   : > { %4493 = vmatmul.mubr.msk.bf16.gmra.mrb[12].mxu1 %vm479_vm2, %v1393_v35  ;;  %v1793_v35 = vshll.u32 %v5565_v55, 16  ;;  %v1412_v55 = vrot.slane %v5111_v41, 1  ;;  %v1856_v41 = vshll.u32 %v5638_v59, 16 }
 0x116   : > { %4496 = vmatprep.mubr.msk.bf16.mxu1 %vm479_vm2, %v1395_v2  ;;  %v3349_v2 = vrot.slane %v5699_v3, 3  ;;  %v1808_v3 = vshrl.u32 %v5590_v60, 16 }
 0x117   : > { %v1795_v20 = vrot.slane %v1793_v35, 2  ;;  %v1413_v1 = vsel %vm937_vm5, %v1410_v45, %v1412_v55  ;;  %v3361_v45 = vrot.slane %v5755_v5, 3 }
 0x118   : > { %4661 = vmatmul.mubr.msk.bf16.gmra.mrb[28].mxu0 %vm479_vm2, %v3042_v29  ;;  %v3350_v29 = vsel %vm3337_vm7, %v3347_v18, %v3349_v2  ;;  %v3352_v61 = vsel %vm3337_vm7, %v3349_v2, %v3351_v44  ;;  %v1810_v9 = vrot.slane %v1808_v3, 1  ;;  %v3371_v3 = vrot.slane %v5799_v14, 3 }
 0x119   : > { %4664 = vmatprep.mubr.msk.bf16.mxu0 %vm479_vm2, %v3051_v51  ;;  %v1796_v19 = vor.u32 %v1795_v20, %v1792_v32  ;;  %v1801_v51 = vrot.slane %v1799_v40, 1  ;;  %v3367_v40 = vrot.slane %v5782_v43, 3 }
 0x11b   : > { %v1797_v57 = vsel %vm1690_vm3, %v5479_v15, %v1796_v19  ;;  %v1805_v60 = vor.u32 %v1804_v16, %v1801_v51  ;;  %v1829_v15 = vshll.u32 %v5606_v12, 16 }
 0x11d   : > { %4497 = vmatmul.mubr.msk.bf16.gmra.mrb[16].mxu1 %vm479_vm2, %v1397_v63  ;;  %v3353_v63 = vrot.slane %v5717_v13, 3  ;;  %v1826_v13 = vshrl.u32 %v5606_v12, 16  ;;  %v1806_v8 = vsel %vm1690_vm3, %v1796_v19, %v1805_v60  ;;  %v1831_v11 = vrot.slane %v1829_v15, 2 }
 0x11e   : > { %4500 = vmatprep.mubr.msk.bf16.mxu1 %vm479_vm2, %v1399_v17  ;;  %v1813_v17 = vrot.slane %v1811_v33, 2 }
 0x11f   : > { %v1828_v4 = vrot.slane %v1826_v13, 1 }
 0x120   : > { %4665 = vmatmul.mubr.msk.bf16.gmra.mrb[32].mxu0 %vm479_vm2, %v3060_v31  ;;  %v3354_v31 = vsel %vm3337_vm7, %v3351_v44, %v3353_v63  ;;  %v1814_v56 = vor.u32 %v1813_v17, %v1810_v9  ;;  %v3365_v44 = vrot.slane %v5777_v36, 3  ;;  %v3369_v36 = vrot.slane %v5795_v62, 3 }
 0x121   : > { %4670 = vmatprep.mubr.msk.bf16.mxu0 %vm479_vm2, %v3340_v58  ;;  %v3356_v58 = vsel %vm3337_vm7, %v3353_v63, %v3355_v48  ;;  %v1832_v50 = vor.u32 %v1831_v11, %v1828_v4  ;;  %v6101_v11 = vld [vmem:[%s6291_s3] ss:$0 sm:$0xff] }
 0x122   : > { %v1815_v7 = vsel %vm1690_vm3, %v1805_v60, %v1814_v56  ;;  %v3370_v43 = vsel %vm3337_vm7, %v3367_v40, %v3369_v36  ;;  %v3372_v33 = vsel %vm3337_vm7, %v3369_v36, %v3371_v3 }
 0x125   : > { %4501 = vmatmul.mubr.msk.bf16.gmra.mrb[20].mxu1 %vm479_vm2, %v1401_v34  ;;  %v1819_v34 = vrot.slane %v1817_v24, 1 }
 0x126   : > { %4504 = vmatprep.mubr.msk.bf16.mxu1 %vm479_vm2, %v1403_v49  ;;  %v3357_v49 = vrot.slane %v5735_v47, 3  ;;  %v1844_v47 = vshrl.u32 %v5622_v26, 16 }
 0x127   : > { %v1823_v12 = vor.u32 %v1822_v38, %v1819_v34 }
 0x128   : > { %4671 = vmatmul.mubr.msk.bf16.vlgmr.msra.gmra.mrb[0].mxu0 %vm479_vm2, %v3342_v6  ;;  %v3359_v6 = vrot.slane %v5740_v52, 3  ;;  %v1846_v23 = vrot.slane %v1844_v47, 1 }
 0x129   : > { %4674 = vmatprep.mubr.msk.bf16.mxu0 %vm479_vm2, %v3344_v42  ;;  %v1838_v42 = vshll.u32 %v5618_v22, 16  ;;  %v1824_v52 = vsel %vm1690_vm3, %v1814_v56, %v1823_v12  ;;  %v1833_v22 = vsel %vm1690_vm3, %v1823_v12, %v1832_v50 }
 0x12a   : > { %v3360_v18 = vsel %vm3337_vm7, %v3357_v49, %v3359_v6  ;;  %v3362_v2 = vsel %vm3337_vm7, %v3359_v6, %v3361_v45 }
 0x12d   : > { %4505 = vmatmul.mubr.msk.bf16.gmra.mrb[24].mxu1 %vm479_vm2, %v1405_v46  ;;  %v3358_v46 = vsel %vm3337_vm7, %v3355_v48, %v3357_v49  ;;  %v6096_v49 = vld [vmem:[%s6290_s2] ss:$0 sm:$0xff] }
 0x12e   : > { %4508 = vmatprep.mubr.msk.bf16.mxu1 %vm479_vm2, %v1407_v37  ;;  %v1847_v37 = vshll.u32 %v5622_v26, 16 }
 0x130   : > { %4675 = vmatmul.mubr.msk.bf16.gmra.mrb[4].mxu0 %vm479_vm2, %v3346_v25  ;;  %v1840_v25 = vrot.slane %v1838_v42, 2  ;;  %v1849_v35 = vrot.slane %v1847_v37, 2 }
 0x131   : > { %4678 = vmatprep.mubr.msk.bf16.mxu0 %vm479_vm2, %v3348_v53  ;;  %v3363_v53 = vrot.slane %v5764_v21, 3  ;;  %v1858_v21 = vrot.slane %v1856_v41, 2 }
 0x132   : > { %v1841_v26 = vor.u32 %v1840_v25, %v1837_v10 }
 0x133   : > { %v3364_v5 = vsel %vm3337_vm7, %v3361_v45, %v3363_v53  ;;  %v3366_v39 = vsel %vm3337_vm7, %v3363_v53, %v3365_v44 }
 0x134   : > { %v1842_v32 = vsel %vm1690_vm3, %v1832_v50, %v1841_v26 }
 0x135   : > { %4509 = vmatmul.mubr.msk.bf16.gmra.mrb[28].mxu1 %vm479_vm2, %v1409_v28  ;;  %v1853_v28 = vshrl.u32 %v5638_v59, 16 }
 0x136   : > { %4512 = vmatprep.mubr.msk.bf16.mxu1 %vm479_vm2, %v1411_v27  ;;  %v1850_v27 = vor.u32 %v1849_v35, %v1846_v23 }
 0x137   : > { %v1855_v20 = vrot.slane %v1853_v28, 1 }
 0x138   : > { %4679 = vmatmul.mubr.msk.bf16.gmra.mrb[8].mxu0 %vm479_vm2, %v3350_v29  ;;  %v1851_v55 = vsel %vm1690_vm3, %v1841_v26, %v1850_v27  ;;  %v3368_v29 = vsel %vm3337_vm7, %v3365_v44, %v3367_v40 }
 0x139   : > { %4682 = vmatprep.mubr.msk.bf16.mxu0 %vm479_vm2, %v3352_v61  ;;  %v1859_v59 = vor.u32 %v1858_v21, %v1855_v20  ;;  %v3373_v61 = vrot.slane %v5935_v0, 3 }
 0x13b   : > { %v1860_v19 = vsel %vm1690_vm3, %v1850_v27, %v1859_v59 }
 0x13d   : > { %4513 = vmatmul.mubr.msk.bf16.gmra.mrb[32].mxu1 %vm479_vm2, %v1413_v1  ;;  %v3374_v1 = vsel %vm3337_vm7, %v3371_v3, %v3373_v61 }
 0x13e   : > { %4538 = vmatprep.mubr.msk.bf16.mxu1 %vm479_vm2, %v1797_v57 }
 0x140   : > { %4683 = vmatmul.mubr.msk.bf16.gmra.mrb[12].mxu0 %vm479_vm2, %v3354_v31 }
 0x141   : > { %4686 = vmatprep.mubr.msk.bf16.mxu0 %vm479_vm2, %v3356_v58 }
 0x145   : > { %4539 = vmatmul.mubr.msk.bf16.vlgmr.msra.gmra.mrb[20].mxu1 %vm479_vm2, %v1806_v8 }
 0x146   : > { %4542 = vmatprep.mubr.msk.bf16.mxu1 %vm479_vm2, %v1815_v7 }
 0x148   : > { %4687 = vmatmul.mubr.msk.bf16.gmra.mrb[16].mxu0 %vm479_vm2, %v3358_v46 }
 0x149   : > { %4690 = vmatprep.mubr.msk.bf16.mxu0 %vm479_vm2, %v3360_v18 }
 0x14d   : > { %4543 = vmatmul.mubr.msk.bf16.gmra.mrb[24].mxu1 %vm479_vm2, %v1824_v52 }
 0x14e   : > { %4546 = vmatprep.mubr.msk.bf16.mxu1 %vm479_vm2, %v1833_v22 }
 0x150   : > { %4691 = vmatmul.mubr.msk.bf16.gmra.mrb[20].mxu0 %vm479_vm2, %v3362_v2 }
 0x151   : > { %4694 = vmatprep.mubr.msk.bf16.mxu0 %vm479_vm2, %v3364_v5 }
 0x155   : > { %4547 = vmatmul.mubr.msk.bf16.gmra.mrb[28].mxu1 %vm479_vm2, %v1842_v32 }
 0x156   : > { %4550 = vmatprep.mubr.msk.bf16.mxu1 %vm479_vm2, %v1851_v55 }
 0x158   : > { %4695 = vmatmul.mubr.msk.bf16.gmra.mrb[24].mxu0 %vm479_vm2, %v3366_v39 }
 0x159   : > { %4698 = vmatprep.mubr.msk.bf16.mxu0 %vm479_vm2, %v3368_v29 }
 0x15d   : > { %4551 = vmatmul.mubr.msk.bf16.gmra.mrb[32].mxu1 %vm479_vm2, %v1860_v19 }
 0x160   : > { %4699 = vmatmul.mubr.msk.bf16.gmra.mrb[28].mxu0 %vm479_vm2, %v3370_v43 }
 0x161   : > { %4702 = vmatprep.mubr.msk.bf16.mxu0 %vm479_vm2, %v3372_v33 }
 0x168   : > { %4703 = vmatmul.mubr.msk.bf16.gmra.mrb[32].mxu0 %vm479_vm2, %v3374_v1 }
 0x1d0   : > { %v4482_v51 = vpop.f32.mrb[0].mxu1 }
 0x1d1   : > { %v1505_v62 = vpop.f32.mrb[1].mxu1 }
 0x1d2   : > { %v4483_v16 = vpop.f32.mrb[2].mxu1 }
 0x1d3   : > { %v1508_v14 = vpop.f32.mrb[3].mxu1 }
 0x1d8   : > { %v4486_v63 = vpop.f32.mrb[4].mxu1 }
 0x1d9   : > { %v1521_v57 = vpop.f32.mrb[5].mxu1 }
 0x1da   : > { %v4487_v9 = vpop.f32.mrb[6].mxu1 }
 0x1db   : > { %v1524_v17 = vpop.f32.mrb[7].mxu1 }
 0x1e0   : > { %v6068_v48 = vpop.f32.mrb[8].mxu1 }
 0x1e1   : > { %v6070_v60 = vpop.f32.mrb[9].mxu1 }
 0x1e2   : > { %v6072_v24 = vpop.f32.mrb[10].mxu1 }
 0x1e3   : > { %v6074_v0 = vpop.f32.mrb[11].mxu1 }
 0x1e8   : > { %v6076_v54 = vpop.f32.mrb[12].mxu1 }
 0x1e9   : > { %v6078_v31 = vpop.f32.mrb[13].mxu1 }
 0x1ea   : > { %v6080_v56 = vpop.f32.mrb[14].mxu1 }
 0x1eb   : > { %v6082_v13 = vpop.f32.mrb[15].mxu1 }
 0x1f0   : > { %v6084_v15 = vpop.f32.mrb[16].mxu1 }
 0x1f1   : > { %v6086_v58 = vpop.f32.mrb[17].mxu1 }
 0x1f2   : > { %v6088_v8 = vpop.f32.mrb[18].mxu1 }
 0x1f3   : > { %v6090_v34 = vpop.f32.mrb[19].mxu1 }
 0x1fb   : > { %v4672_v38 = vpop.f32.mrb[0].mxu0 }
 0x1fc   : > { %v4708_v7 = vadd.f32 %v4672_v38, %v4482_v51  ;;  %v3466_v4 = vpop.f32.mrb[1].mxu0 }
 0x1fd   : > { %v4709_v6 = vadd.f32 %v3466_v4, %v1505_v62  ;;  %v4673_v12 = vpop.f32.mrb[2].mxu0 }
 0x1fe   : > { %v3654_v30 = vmul.f32 %v4708_v7, %v6096_v49  ;;  %v4710_v42 = vadd.f32 %v4673_v12, %v4483_v16  ;;  %v3469_v46 = vpop.f32.mrb[3].mxu0 }
 0x1ff   : > { %v3652_v50 = vmul.f32 %v4709_v6, %v6096_v49  ;;  %v4711_v47 = vadd.f32 %v3469_v46, %v1508_v14 }
 0x200   : > { %v3697_v37 = vadd.f32 %v6101_v11, %v3654_v30  ;;  %v3655_v18 = vmul.f32 %v4710_v42, %v6096_v49 }
 0x201   : > { %v3695_v52 = vadd.f32 %v6101_v11, %v3652_v50  ;;  %v3653_v10 = vmul.f32 %v4711_v47, %v6096_v49 }
 0x202   : > { %vm3733_vm8 = vcmp.ge.f32.partialorder %v3697_v37, 0.0  ;;  %v3769_v25 = vmul.f32 0.1, %v3697_v37  ;;  %v3698_v45 = vadd.f32 %v6101_v11, %v3655_v18 }
 0x203   : > { %vm3731_vm9 = vcmp.ge.f32.partialorder %v3695_v52, 0.0  ;;  %v3767_v22 = vmul.f32 0.1, %v3695_v52  ;;  %v3696_v23 = vadd.f32 %v6101_v11, %v3653_v10  ;;  %v4676_v35 = vpop.f32.mrb[4].mxu0 }
 0x204   : > { %v3805_v53 = vsel %vm3733_vm8, %v3697_v37, %v3769_v25  ;;  %vm3734_vm10 = vcmp.ge.f32.partialorder %v3698_v45, 0.0  ;;  %v3770_v26 = vmul.f32 0.1, %v3698_v45  ;;  %v4712_v28 = vadd.f32 %v4676_v35, %v4486_v63  ;;  %v3482_v41 = vpop.f32.mrb[5].mxu0 }
 0x205   : > { %3841 = vst [vmem:[%s6113_s20 + $0x10] sm:$0xff] %v3805_v53  ;;  %v3803_v2 = vsel %vm3731_vm9, %v3695_v52, %v3767_v22  ;;  %vm3732_vm11 = vcmp.ge.f32.partialorder %v3696_v23, 0.0  ;;  %v3768_v27 = vmul.f32 0.1, %v3696_v23  ;;  %v4713_v5 = vadd.f32 %v3482_v41, %v1521_v57  ;;  %v4677_v32 = vpop.f32.mrb[6].mxu0 }
 0x206   : > { %3839 = vst [vmem:[%s6113_s20] sm:$0xff] %v3803_v2  ;;  %v3806_v20 = vsel %vm3734_vm10, %v3698_v45, %v3770_v26  ;;  %v3658_v21 = vmul.f32 %v4712_v28, %v6096_v49  ;;  %v4714_v44 = vadd.f32 %v4677_v32, %v4487_v9  ;;  %v3485_v55 = vpop.f32.mrb[7].mxu0 }
 0x207   : > { %3842 = vst [vmem:[%s6113_s20 + $0x18] sm:$0xff] %v3806_v20  ;;  %v3804_v40 = vsel %vm3732_vm11, %v3696_v23, %v3768_v27  ;;  %v3656_v59 = vmul.f32 %v4713_v5, %v6096_v49  ;;  %v4715_v39 = vadd.f32 %v3485_v55, %v1524_v17 }
 0x208   : > { %3840 = vst [vmem:[%s6113_s20 + $0x8] sm:$0xff] %v3804_v40  ;;  %v3701_v29 = vadd.f32 %v6101_v11, %v3658_v21  ;;  %v3659_v19 = vmul.f32 %v4714_v44, %v6096_v49 }
 0x209   : > { %v3699_v36 = vadd.f32 %v6101_v11, %v3656_v59  ;;  %v3657_v3 = vmul.f32 %v4715_v39, %v6096_v49 }
 0x20a   : > { %vm3737_vm12 = vcmp.ge.f32.partialorder %v3701_v29, 0.0  ;;  %v3773_v43 = vmul.f32 0.1, %v3701_v29  ;;  %v3702_v33 = vadd.f32 %v6101_v11, %v3659_v19 }
 0x20b   : > { %vm3735_vm13 = vcmp.ge.f32.partialorder %v3699_v36, 0.0  ;;  %v3771_v61 = vmul.f32 0.1, %v3699_v36  ;;  %v3700_v1 = vadd.f32 %v6101_v11, %v3657_v3  ;;  %v4680_v51 = vpop.f32.mrb[8].mxu0 }
 0x20c   : > { %v3809_v62 = vsel %vm3737_vm12, %v3701_v29, %v3773_v43  ;;  %vm3738_vm14 = vcmp.ge.f32.partialorder %v3702_v33, 0.0  ;;  %v3774_v16 = vmul.f32 0.1, %v3702_v33  ;;  %v4716_v14 = vadd.f32 %v4680_v51, %v6068_v48  ;;  %v3498_v63 = vpop.f32.mrb[9].mxu0 }
 0x20d   : > { %3845 = vst [vmem:[%s6113_s20 + $0x30] sm:$0xff] %v3809_v62  ;;  %v3807_v57 = vsel %vm3735_vm13, %v3699_v36, %v3771_v61  ;;  %vm3736_vm15 = vcmp.ge.f32.partialorder %v3700_v1, 0.0  ;;  %v3772_v9 = vmul.f32 0.1, %v3700_v1  ;;  %v4717_v17 = vadd.f32 %v3498_v63, %v6070_v60  ;;  %v4681_v38 = vpop.f32.mrb[10].mxu0 }
 0x20e   : > { %3843 = vst [vmem:[%s6113_s20 + $0x20] sm:$0xff] %v3807_v57  ;;  %v3810_v7 = vsel %vm3738_vm14, %v3702_v33, %v3774_v16  ;;  %v3662_v4 = vmul.f32 %v4716_v14, %v6096_v49  ;;  %v4718_v6 = vadd.f32 %v4681_v38, %v6072_v24  ;;  %v3501_v12 = vpop.f32.mrb[11].mxu0 }
 0x20f   : > { %3846 = vst [vmem:[%s6113_s20 + $0x38] sm:$0xff] %v3810_v7  ;;  %v3808_v30 = vsel %vm3736_vm15, %v3700_v1, %v3772_v9  ;;  %v3660_v48 = vmul.f32 %v4717_v17, %v6096_v49  ;;  %v4719_v42 = vadd.f32 %v3501_v12, %v6074_v0 }
 0x210   : > { %3844 = vst [vmem:[%s6113_s20 + $0x28] sm:$0xff] %v3808_v30  ;;  %v3705_v46 = vadd.f32 %v6101_v11, %v3662_v4  ;;  %v3663_v60 = vmul.f32 %v4718_v6, %v6096_v49 }
 0x211   : > { %v3703_v50 = vadd.f32 %v6101_v11, %v3660_v48  ;;  %v3661_v47 = vmul.f32 %v4719_v42, %v6096_v49 }
 0x212   : > { %vm3741_vm0 = vcmp.ge.f32.partialorder %v3705_v46, 0.0  ;;  %v3777_v37 = vmul.f32 0.1, %v3705_v46  ;;  %v3706_v24 = vadd.f32 %v6101_v11, %v3663_v60 }
 0x213   : > { %vm3739_vm1 = vcmp.ge.f32.partialorder %v3703_v50, 0.0  ;;  %v3775_v18 = vmul.f32 0.1, %v3703_v50  ;;  %v3704_v52 = vadd.f32 %v6101_v11, %v3661_v47  ;;  %v4684_v0 = vpop.f32.mrb[12].mxu0 }
 0x214   : > { %v3813_v10 = vsel %vm3741_vm0, %v3705_v46, %v3777_v37  ;;  %vm3742_vm2 = vcmp.ge.f32.partialorder %v3706_v24, 0.0  ;;  %v3778_v25 = vmul.f32 0.1, %v3706_v24  ;;  %v4720_v45 = vadd.f32 %v4684_v0, %v6076_v54  ;;  %v3514_v22 = vpop.f32.mrb[13].mxu0 }
 0x215   : > { %3849 = vst [vmem:[%s6113_s20 + $0x50] sm:$0xff] %v3813_v10  ;;  %v3811_v23 = vsel %vm3739_vm1, %v3703_v50, %v3775_v18  ;;  %vm3740_vm3 = vcmp.ge.f32.partialorder %v3704_v52, 0.0  ;;  %v3776_v35 = vmul.f32 0.1, %v3704_v52  ;;  %v4721_v53 = vadd.f32 %v3514_v22, %v6078_v31  ;;  %v4685_v26 = vpop.f32.mrb[14].mxu0 }
 0x216   : > { %3847 = vst [vmem:[%s6113_s20 + $0x40] sm:$0xff] %v3811_v23  ;;  %v3814_v28 = vsel %vm3742_vm2, %v3706_v24, %v3778_v25  ;;  %v3666_v41 = vmul.f32 %v4720_v45, %v6096_v49  ;;  %v4722_v2 = vadd.f32 %v4685_v26, %v6080_v56  ;;  %v3517_v27 = vpop.f32.mrb[15].mxu0 }
 0x217   : > { %3850 = vst [vmem:[%s6113_s20 + $0x58] sm:$0xff] %v3814_v28  ;;  %v3812_v32 = vsel %vm3740_vm3, %v3704_v52, %v3776_v35  ;;  %v3664_v54 = vmul.f32 %v4721_v53, %v6096_v49  ;;  %v4723_v20 = vadd.f32 %v3517_v27, %v6082_v13 }
 0x218   : > { %v4540_v5 = vpop.f32.mrb[20].mxu1  ;;  %3848 = vst [vmem:[%s6113_s20 + $0x48] sm:$0xff] %v3812_v32  ;;  %v3709_v44 = vadd.f32 %v6101_v11, %v3666_v41  ;;  %v3667_v31 = vmul.f32 %v4722_v2, %v6096_v49 }
 0x219   : > { %v2032_v21 = vpop.f32.mrb[21].mxu1  ;;  %v3707_v40 = vadd.f32 %v6101_v11, %v3664_v54  ;;  %v3665_v56 = vmul.f32 %v4723_v20, %v6096_v49 }
 0x21a   : > { %v4541_v55 = vpop.f32.mrb[22].mxu1  ;;  %vm3745_vm4 = vcmp.ge.f32.partialorder %v3709_v44, 0.0  ;;  %v3781_v39 = vmul.f32 0.1, %v3709_v44  ;;  %v3710_v29 = vadd.f32 %v6101_v11, %v3667_v31 }
 0x21b   : > { %v6157_v59 = vpop.f32.mrb[23].mxu1  ;;  %vm3743_vm5 = vcmp.ge.f32.partialorder %v3707_v40, 0.0  ;;  %v3779_v13 = vmul.f32 0.1, %v3707_v40  ;;  %v3708_v19 = vadd.f32 %v6101_v11, %v3665_v56  ;;  %v4688_v36 = vpop.f32.mrb[16].mxu0 }
 0x21c   : > { %v3817_v3 = vsel %vm3745_vm4, %v3709_v44, %v3781_v39  ;;  %vm3746_vm6 = vcmp.ge.f32.partialorder %v3710_v29, 0.0  ;;  %v3782_v43 = vmul.f32 0.1, %v3710_v29  ;;  %v4724_v33 = vadd.f32 %v4688_v36, %v6084_v15  ;;  %v3530_v61 = vpop.f32.mrb[17].mxu0 }
 0x21d   : > { %3853 = vst [vmem:[%s6113_s20 + $0x70] sm:$0xff] %v3817_v3  ;;  %v3815_v1 = vsel %vm3743_vm5, %v3707_v40, %v3779_v13  ;;  %vm3744_vm7 = vcmp.ge.f32.partialorder %v3708_v19, 0.0  ;;  %v3780_v51 = vmul.f32 0.1, %v3708_v19  ;;  %v4725_v62 = vadd.f32 %v3530_v61, %v6086_v58  ;;  %v4689_v16 = vpop.f32.mrb[18].mxu0 }
 0x21e   : > { %3851 = vst [vmem:[%s6113_s20 + $0x60] sm:$0xff] %v3815_v1  ;;  %v3818_v14 = vsel %vm3746_vm6, %v3710_v29, %v3782_v43  ;;  %v3670_v63 = vmul.f32 %v4724_v33, %v6096_v49  ;;  %v4726_v57 = vadd.f32 %v4689_v16, %v6088_v8  ;;  %v3533_v9 = vpop.f32.mrb[19].mxu0 }
 0x21f   : > { %3854 = vst [vmem:[%s6113_s20 + $0x78] sm:$0xff] %v3818_v14  ;;  %v3816_v38 = vsel %vm3744_vm7, %v3708_v19, %v3780_v51  ;;  %v3668_v15 = vmul.f32 %v4725_v62, %v6096_v49  ;;  %v4727_v7 = vadd.f32 %v3533_v9, %v6090_v34 }
 0x220   : > { %v4544_v17 = vpop.f32.mrb[24].mxu1  ;;  %3852 = vst [vmem:[%s6113_s20 + $0x68] sm:$0xff] %v3816_v38  ;;  %v3713_v6 = vadd.f32 %v6101_v11, %v3670_v63  ;;  %v3671_v58 = vmul.f32 %v4726_v57, %v6096_v49 }
 0x221   : > { %v2048_v4 = vpop.f32.mrb[25].mxu1  ;;  %v3711_v30 = vadd.f32 %v6101_v11, %v3668_v15  ;;  %v3669_v8 = vmul.f32 %v4727_v7, %v6096_v49 }
 0x222   : > { %v4545_v12 = vpop.f32.mrb[26].mxu1  ;;  %vm3749_vm8 = vcmp.ge.f32.partialorder %v3713_v6, 0.0  ;;  %v3785_v42 = vmul.f32 0.1, %v3713_v6  ;;  %v3714_v46 = vadd.f32 %v6101_v11, %v3671_v58 }
 0x223   : > { %v6175_v48 = vpop.f32.mrb[27].mxu1  ;;  %vm3747_vm9 = vcmp.ge.f32.partialorder %v3711_v30, 0.0  ;;  %v3783_v34 = vmul.f32 0.1, %v3711_v30  ;;  %v3712_v60 = vadd.f32 %v6101_v11, %v3669_v8  ;;  %v4692_v50 = vpop.f32.mrb[20].mxu0 }
 0x224   : > { %v3821_v47 = vsel %vm3749_vm8, %v3713_v6, %v3785_v42  ;;  %vm3750_vm10 = vcmp.ge.f32.partialorder %v3714_v46, 0.0  ;;  %v3786_v37 = vmul.f32 0.1, %v3714_v46  ;;  %v4728_v24 = vadd.f32 %v4692_v50, %v4540_v5  ;;  %v3546_v18 = vpop.f32.mrb[21].mxu0 }
 0x225   : > { %3857 = vst [vmem:[%s6113_s20 + $0x90] sm:$0xff] %v3821_v47  ;;  %v3819_v52 = vsel %vm3747_vm9, %v3711_v30, %v3783_v34  ;;  %vm3748_vm11 = vcmp.ge.f32.partialorder %v3712_v60, 0.0  ;;  %v3784_v0 = vmul.f32 0.1, %v3712_v60  ;;  %v4729_v10 = vadd.f32 %v3546_v18, %v2032_v21  ;;  %v4693_v25 = vpop.f32.mrb[22].mxu0 }
 0x226   : > { %3855 = vst [vmem:[%s6113_s20 + $0x80] sm:$0xff] %v3819_v52  ;;  %v3822_v45 = vsel %vm3750_vm10, %v3714_v46, %v3786_v37  ;;  %v3674_v22 = vmul.f32 %v4728_v24, %v6096_v49  ;;  %v4730_v23 = vadd.f32 %v4693_v25, %v4541_v55  ;;  %v3549_v35 = vpop.f32.mrb[23].mxu0 }
 0x227   : > { %3858 = vst [vmem:[%s6113_s20 + $0x98] sm:$0xff] %v3822_v45  ;;  %v3820_v26 = vsel %vm3748_vm11, %v3712_v60, %v3784_v0  ;;  %v3672_v28 = vmul.f32 %v4729_v10, %v6096_v49  ;;  %v4731_v41 = vadd.f32 %v3549_v35, %v6157_v59 }
 0x228   : > { %v4548_v53 = vpop.f32.mrb[28].mxu1  ;;  %3856 = vst [vmem:[%s6113_s20 + $0x88] sm:$0xff] %v3820_v26  ;;  %v3717_v27 = vadd.f32 %v6101_v11, %v3674_v22  ;;  %v3675_v5 = vmul.f32 %v4730_v23, %v6096_v49 }
 0x229   : > { %v2064_v2 = vpop.f32.mrb[29].mxu1  ;;  %v3715_v54 = vadd.f32 %v6101_v11, %v3672_v28  ;;  %v3673_v20 = vmul.f32 %v4731_v41, %v6096_v49 }
 0x22a   : > { %v4549_v32 = vpop.f32.mrb[30].mxu1  ;;  %vm3753_vm12 = vcmp.ge.f32.partialorder %v3717_v27, 0.0  ;;  %v3789_v44 = vmul.f32 0.1, %v3717_v27  ;;  %v3718_v31 = vadd.f32 %v6101_v11, %v3675_v5 }
 0x22b   : > { %v6190_v21 = vpop.f32.mrb[31].mxu1  ;;  %vm3751_vm13 = vcmp.ge.f32.partialorder %v3715_v54, 0.0  ;;  %v3787_v55 = vmul.f32 0.1, %v3715_v54  ;;  %v3716_v40 = vadd.f32 %v6101_v11, %v3673_v20  ;;  %v4696_v56 = vpop.f32.mrb[24].mxu0 }
 0x22c   : > { %v3825_v59 = vsel %vm3753_vm12, %v3717_v27, %v3789_v44  ;;  %vm3754_vm14 = vcmp.ge.f32.partialorder %v3718_v31, 0.0  ;;  %v3790_v39 = vmul.f32 0.1, %v3718_v31  ;;  %v4732_v29 = vadd.f32 %v4696_v56, %v4544_v17  ;;  %v3562_v13 = vpop.f32.mrb[25].mxu0 }
 0x22d   : > { %3861 = vst [vmem:[%s6113_s20 + $0xb0] sm:$0xff] %v3825_v59  ;;  %v3823_v19 = vsel %vm3751_vm13, %v3715_v54, %v3787_v55  ;;  %vm3752_vm15 = vcmp.ge.f32.partialorder %v3716_v40, 0.0  ;;  %v3788_v36 = vmul.f32 0.1, %v3716_v40  ;;  %v4733_v3 = vadd.f32 %v3562_v13, %v2048_v4  ;;  %v4697_v43 = vpop.f32.mrb[26].mxu0 }
 0x22e   : > { %3859 = vst [vmem:[%s6113_s20 + $0xa0] sm:$0xff] %v3823_v19  ;;  %v3826_v33 = vsel %vm3754_vm14, %v3718_v31, %v3790_v39  ;;  %v3678_v61 = vmul.f32 %v4732_v29, %v6096_v49  ;;  %v4734_v1 = vadd.f32 %v4697_v43, %v4545_v12  ;;  %v3565_v51 = vpop.f32.mrb[27].mxu0 }
 0x22f   : > { %3862 = vst [vmem:[%s6113_s20 + $0xb8] sm:$0xff] %v3826_v33  ;;  %v3824_v16 = vsel %vm3752_vm15, %v3716_v40, %v3788_v36  ;;  %v3676_v14 = vmul.f32 %v4733_v3, %v6096_v49  ;;  %v4735_v63 = vadd.f32 %v3565_v51, %v6175_v48 }
 0x230   : > { %v4552_v62 = vpop.f32.mrb[32].mxu1  ;;  %3860 = vst [vmem:[%s6113_s20 + $0xa8] sm:$0xff] %v3824_v16  ;;  %v3721_v9 = vadd.f32 %v6101_v11, %v3678_v61  ;;  %v3679_v17 = vmul.f32 %v4734_v1, %v6096_v49 }
 0x231   : > { %v2080_v57 = vpop.f32.mrb[33].mxu1  ;;  %v3719_v15 = vadd.f32 %v6101_v11, %v3676_v14  ;;  %v3677_v7 = vmul.f32 %v4735_v63, %v6096_v49 }
 0x232   : > { %v4553_v38 = vpop.f32.mrb[34].mxu1  ;;  %vm3757_vm0 = vcmp.ge.f32.partialorder %v3721_v9, 0.0  ;;  %v3793_v6 = vmul.f32 0.1, %v3721_v9  ;;  %v3722_v58 = vadd.f32 %v6101_v11, %v3679_v17 }
 0x233   : > { %v2083_v4 = vpop.f32.mrb[35].mxu1  ;;  %vm3755_vm1 = vcmp.ge.f32.partialorder %v3719_v15, 0.0  ;;  %v3791_v12 = vmul.f32 0.1, %v3719_v15  ;;  %v3720_v30 = vadd.f32 %v6101_v11, %v3677_v7  ;;  %v4700_v8 = vpop.f32.mrb[28].mxu0 }
 0x234   : > { %v3829_v48 = vsel %vm3757_vm0, %v3721_v9, %v3793_v6  ;;  %vm3758_vm2 = vcmp.ge.f32.partialorder %v3722_v58, 0.0  ;;  %v3794_v42 = vmul.f32 0.1, %v3722_v58  ;;  %v4736_v46 = vadd.f32 %v4700_v8, %v4548_v53  ;;  %v3578_v34 = vpop.f32.mrb[29].mxu0 }
 0x235   : > { %3865 = vst [vmem:[%s6113_s20 + $0xd0] sm:$0xff] %v3829_v48  ;;  %v3827_v60 = vsel %vm3755_vm1, %v3719_v15, %v3791_v12  ;;  %vm3756_vm3 = vcmp.ge.f32.partialorder %v3720_v30, 0.0  ;;  %v3792_v50 = vmul.f32 0.1, %v3720_v30  ;;  %v4737_v47 = vadd.f32 %v3578_v34, %v2064_v2  ;;  %v4701_v37 = vpop.f32.mrb[30].mxu0 }
 0x236   : > { %3863 = vst [vmem:[%s6113_s20 + $0xc0] sm:$0xff] %v3827_v60  ;;  %v3830_v24 = vsel %vm3758_vm2, %v3722_v58, %v3794_v42  ;;  %v3682_v18 = vmul.f32 %v4736_v46, %v6096_v49  ;;  %v4738_v52 = vadd.f32 %v4701_v37, %v4549_v32  ;;  %v3581_v0 = vpop.f32.mrb[31].mxu0 }
 0x237   : > { %3866 = vst [vmem:[%s6113_s20 + $0xd8] sm:$0xff] %v3830_v24  ;;  %v3828_v10 = vsel %vm3756_vm3, %v3720_v30, %v3792_v50  ;;  %v3680_v25 = vmul.f32 %v4737_v47, %v6096_v49  ;;  %v4739_v45 = vadd.f32 %v3581_v0, %v6190_v21 }
 0x238   : > { %3864 = vst [vmem:[%s6113_s20 + $0xc8] sm:$0xff] %v3828_v10  ;;  %v3725_v22 = vadd.f32 %v6101_v11, %v3682_v18  ;;  %v3683_v23 = vmul.f32 %v4738_v52, %v6096_v49 }
 0x239   : > { %v3723_v35 = vadd.f32 %v6101_v11, %v3680_v25  ;;  %v3681_v53 = vmul.f32 %v4739_v45, %v6096_v49 }
 0x23a   : > { %vm3761_vm4 = vcmp.ge.f32.partialorder %v3725_v22, 0.0  ;;  %v3797_v26 = vmul.f32 0.1, %v3725_v22  ;;  %v3726_v28 = vadd.f32 %v6101_v11, %v3683_v23 }
 0x23b   : > { %vm3759_vm5 = vcmp.ge.f32.partialorder %v3723_v35, 0.0  ;;  %v3795_v41 = vmul.f32 0.1, %v3723_v35  ;;  %v3724_v2 = vadd.f32 %v6101_v11, %v3681_v53  ;;  %v4704_v27 = vpop.f32.mrb[32].mxu0 }
 0x23c   : > { %v3833_v5 = vsel %vm3761_vm4, %v3725_v22, %v3797_v26  ;;  %vm3762_vm6 = vcmp.ge.f32.partialorder %v3726_v28, 0.0  ;;  %v3798_v32 = vmul.f32 0.1, %v3726_v28  ;;  %v4740_v54 = vadd.f32 %v4704_v27, %v4552_v62  ;;  %v3594_v20 = vpop.f32.mrb[33].mxu0 }
 0x23d   : > { %3869 = vst [vmem:[%s6113_s20 + $0xf0] sm:$0xff] %v3833_v5  ;;  %v3831_v21 = vsel %vm3759_vm5, %v3723_v35, %v3795_v41  ;;  %vm3760_vm7 = vcmp.ge.f32.partialorder %v3724_v2, 0.0  ;;  %v3796_v44 = vmul.f32 0.1, %v3724_v2  ;;  %v4741_v31 = vadd.f32 %v3594_v20, %v2080_v57  ;;  %v4705_v55 = vpop.f32.mrb[34].mxu0 }
 0x23e   : > { %3867 = vst [vmem:[%s6113_s20 + $0xe0] sm:$0xff] %v3831_v21  ;;  %v3834_v40 = vsel %vm3762_vm6, %v3726_v28, %v3798_v32  ;;  %v3686_v56 = vmul.f32 %v4740_v54, %v6096_v49  ;;  %v4742_v59 = vadd.f32 %v4705_v55, %v4553_v38  ;;  %v3597_v39 = vpop.f32.mrb[35].mxu0 }
 0x23f   : > { %3870 = vst [vmem:[%s6113_s20 + $0xf8] sm:$0xff] %v3834_v40  ;;  %v3832_v29 = vsel %vm3760_vm7, %v3724_v2, %v3796_v44  ;;  %v3684_v13 = vmul.f32 %v4741_v31, %v6096_v49  ;;  %v4743_v19 = vadd.f32 %v3597_v39, %v2083_v4 }
 0x240   : > { %3868 = vst [vmem:[%s6113_s20 + $0xe8] sm:$0xff] %v3832_v29  ;;  %v3729_v36 = vadd.f32 %v6101_v11, %v3686_v56  ;;  %v3687_v3 = vmul.f32 %v4742_v59, %v6096_v49 }
 0x241   : > { %v3727_v43 = vadd.f32 %v6101_v11, %v3684_v13  ;;  %v3685_v33 = vmul.f32 %v4743_v19, %v6096_v49 }
 0x242   : > { %vm3765_vm8 = vcmp.ge.f32.partialorder %v3729_v36, 0.0  ;;  %v3801_v61 = vmul.f32 0.1, %v3729_v36  ;;  %v3730_v1 = vadd.f32 %v6101_v11, %v3687_v3 }
 0x243   : > { %vm3763_vm9 = vcmp.ge.f32.partialorder %v3727_v43, 0.0  ;;  %v3799_v51 = vmul.f32 0.1, %v3727_v43  ;;  %v3728_v62 = vadd.f32 %v6101_v11, %v3685_v33 }
 0x244   : > { %v3837_v16 = vsel %vm3765_vm8, %v3729_v36, %v3801_v61  ;;  %vm3766_vm10 = vcmp.ge.f32.partialorder %v3730_v1, 0.0  ;;  %v3802_v14 = vmul.f32 0.1, %v3730_v1 }
 0x245   : > { %3873 = vst [vmem:[%s6113_s20 + $0x110] sm:$0xff] %v3837_v16  ;;  %v3835_v49 = vsel %vm3763_vm9, %v3727_v43, %v3799_v51  ;;  %vm3764_vm11 = vcmp.ge.f32.partialorder %v3728_v62, 0.0  ;;  %v3800_v63 = vmul.f32 0.1, %v3728_v62 }
 0x246   : > { %3871 = vst [vmem:[%s6113_s20 + $0x100] sm:$0xff] %v3835_v49  ;;  %v3838_v11 = vsel %vm3766_vm10, %v3730_v1, %v3802_v14 }
 0x247   : > { %3874 = vst [vmem:[%s6113_s20 + $0x118] sm:$0xff] %v3838_v11  ;;  %v3836_v57 = vsel %vm3764_vm11, %v3728_v62, %v3800_v63 }
 0x248   : > { %3872 = vst [vmem:[%s6113_s20 + $0x108] sm:$0xff] %v3836_v57 }
 0x249   : > { %5136 = shalt.err (!%p5133_p3)
}
 0x24a   : > { %s5137_s8 = scalar_lea.hbm %s6238_s28, 4608  ;;  %s5141_s11 = scalar_lea.hbm %s6292_s4, 9216 }
 0x24b   : > { %p5138_p4 = scmp.ne.s32.totalorder %s6238_s28, %s5137_s8  ;;  %p5142_p9 = scmp.lt.u32.totalorder %s6238_s28, %s6292_s4 }
 0x24c   : > { %p5143_p10 = scmp.lt.u32.totalorder %s5141_s11, %s5137_s8  ;;  %p5145_p12 = scmp.lt.u32.totalorder %s5137_s8, %s6238_s28 }
 0x24d   : > { %p5139_p7 = pnand %p5138_p4, %p5253_p5 }
 0x24e   : > { %p5144_p11 = por %p5143_p10, %p5142_p9 }
 0x24f   : > { %p5140_p8 = pneg %p5139_p7 }
 0x250   : > { %p5146_p13 = por %p5145_p12, %p5144_p11 }
 0x252   : > { %p5147_p0 = pnand %p5146_p13, %p5140_p8 }
 0x254   : > { %5150 = shalt.err (!%p5147_p0)
}
 0x255   : > { %s5188_s14 = smov 128   ;;  %s5189_s20 = smov 8  }
 0x256   : > { %5009 = dma.vmem_to_hbm [thread:$0]  (%p5253_p5), %s6240_s23, 4608, %s6238_s28, %s6247_s29, %s5188_s14, %s5188_s14, %s5189_s20  }
 0x257 PF: > { %p5015_p1 = scmp.ge.s32.totalorder %s5185_s18, 2  ;;  %s3904_s22 = sand.u32 1, %s5173_s15  }
 0x258   : > { %s3905_s19 = scalar_lea.sflag [#allocation3], %s3904_s22 }
 0x259   : > { %p5012_p2 = pnand %p5015_p1, %p5257_p6 }
 0x25b   : > { %5168 = dma.done.wait (!%p5012_p2), %s3905_s19, 4608  }
 0x25c   : > { %5170 = vsyncadd (!%p5012_p2), %s3905_s19, 4294962688  ;;  %p14_p3 = scmp.ge.s32.totalorder %s5240_s21, 4   ;;  %s6295_s15 = smov %s5177_s16 }
 0x25d   : > { %s6296_s16 = smov %s5181_s17  ;;  %s6297_s17 = smov %s5251_s24 }
 0x25e   : > { %s6298_s18 = smov %s5240_s21  ;;  %16 = sbr.rel (!%p14_p3) target bundleno = 3 (0x3), region = 79 }
 0x265   :  { %3910 = vsyncpa [#allocation3], 1 }
 0x266   :  { %3912 = vsyncpa [#allocation3 + $0x1], 1 }

</bundles_post_ra>
